<compile_context>
chip_gen: v5e
topology: v5e:2x2
jax: 0.10.0
libtpu: 0.0.40
codegen_flags: <defaults>
</compile_context>

<pallas_src>
import functools

import jax
import jax.numpy as jnp
from jax.experimental import pallas as pl
from jax.experimental.pallas import tpu as pltpu


# ------------------------------ fused kernel -------------------------------

def _encoder_kernel(x_emb_ref, mask_ref, emb_g_ref, emb_b_ref,
                    w_qkv_ref, b_qkv_ref, wo_ref, bo_ref, ln1g_ref, ln1b_ref,
                    wi_ref, bi_ref, wf_ref, bf_ref, ln2g_ref, ln2b_ref,
                    wp_ref, bp_ref, wfc_ref, bfc_ref,
                    o_ref,
                    x_sc, xb_sc, ctx_sc, *, cfg):
    bt, s = cfg["batch_tile"], cfg["seq"]
    h, nh, dh = cfg["hidden"], cfg["heads"], cfg["head_dim"]
    e = cfg["embed_size"]
    rows = bt * s
    scale = 1.0 / float(dh) ** 0.5
    eps = 1e-5
    bf16 = jnp.bfloat16
    layer = pl.program_id(1)

    def layer_norm(v, g, b):
        mu = jnp.mean(v, axis=-1, keepdims=True)
        var = jnp.mean((v - mu) ** 2, axis=-1, keepdims=True)
        return (v - mu) * jax.lax.rsqrt(var + eps) * g + b

    def mm(a_bf16, w_bf16, bias_f32):
        # bf16 MXU operands, f32 accumulation, f32 bias add.
        return jnp.dot(a_bf16, w_bf16,
                       preferred_element_type=jnp.float32) + bias_f32

    # ---- embedding LayerNorm: only on the first layer step of this tile ----
    @pl.when(layer == 0)
    def _init():
        x0 = layer_norm(x_emb_ref[...].reshape(rows, h),
                        emb_g_ref[...], emb_b_ref[...])
        x_sc[...] = x0
        xb_sc[...] = x0.astype(bf16)

    # ---- one transformer layer (this layer's weights streamed into VMEM) ----
    qkv = mm(xb_sc[...], w_qkv_ref[0], b_qkv_ref[0])             # (rows, 3h) f32
    qkv3 = qkv.reshape(bt, s, 3 * h)
    q3 = (qkv3[:, :, 0:h] * scale).astype(bf16)                  # scale folded pre-cast
    k3 = qkv3[:, :, h:2 * h].astype(bf16)
    v3 = qkv3[:, :, 2 * h:3 * h].astype(bf16)
    add_mask = jnp.broadcast_to(mask_ref[...], (bt, s, s))       # hoisted out of head loop

    for hd in range(nh):                                         # nh batched dots (batch = bt)
        c0 = hd * dh
        sc_ = jnp.einsum('bqd,bkd->bqk',
                         q3[:, :, c0:c0 + dh], k3[:, :, c0:c0 + dh],
                         preferred_element_type=jnp.float32)     # (bt, s, s)
        sc_ = sc_ + add_mask
        sc_ = sc_ - jnp.max(sc_, axis=-1, keepdims=True)
        p = jnp.exp(sc_)
        p = p * pl.reciprocal(jnp.sum(p, axis=-1, keepdims=True), approx=True)
        ctx_h = jnp.einsum('bqk,bkd->bqd',
                           p.astype(bf16), v3[:, :, c0:c0 + dh],
                           preferred_element_type=jnp.float32)   # (bt, s, dh)
        ctx_sc[:, c0:c0 + dh] = ctx_h.reshape(rows, dh)          # scratch write, no concat

    attn = mm(ctx_sc[...].astype(bf16), wo_ref[0], bo_ref[0])
    x = layer_norm(x_sc[...] + attn, ln1g_ref[0], ln1b_ref[0])   # post-LN
    xb = x.astype(bf16)

    # TODO(synk): HF RoBERTa uses exact-erf GELU; tanh approximation used here.
    ffn = jax.nn.gelu(mm(xb, wi_ref[0], bi_ref[0]), approximate=True)
    ffn = mm(ffn.astype(bf16), wf_ref[0], bf_ref[0])
    x = layer_norm(x + ffn, ln2g_ref[0], ln2b_ref[0])
    x_sc[...] = x
    xb_sc[...] = x.astype(bf16)

    # ---- pooler + dropout(eval=identity) + fc: only after the last layer ----
    @pl.when(layer == pl.num_programs(1) - 1)
    def _head():
        cls = x_sc[pl.ds(0, bt, stride=s), :]                    # strided CLS read (bt, h)
        pooled = jnp.tanh(mm(cls.astype(bf16), wp_ref[...], bp_ref[...]))
        out = mm(pooled.astype(bf16), wfc_ref[...], bfc_ref[...])
        o_ref[...] = out.reshape(bt, 1, e).astype(o_ref.dtype)


def fused_qst_encoder(x_emb, add_mask, kp, cfg):
    b, s, h = x_emb.shape
    nl, e = cfg["layers"], cfg["embed_size"]
    nh, dh, inter = cfg["heads"], cfg["head_dim"], cfg["intermediate"]
    bt = cfg["batch_tile"]
    assert b % bt == 0, (b, bt)
    nbt = b // bt

    def per_batch(tail):   # blocked over the leading batch dim
        tail = tuple(int(t) for t in tail)
        return pl.BlockSpec((bt,) + tail, lambda bi, l: (bi,) + (0,) * len(tail))

    def per_layer(tail):   # streamed: one layer's block per grid step
        tail = tuple(int(t) for t in tail)
        return pl.BlockSpec((1,) + tail, lambda bi, l: (l,) + (0,) * len(tail))

    def resident(arr):     # whole array, same block every step (stays in VMEM)
        n = arr.ndim
        return pl.BlockSpec(arr.shape, lambda bi, l: (0,) * n)

    inputs = [
        (x_emb,        per_batch((s, h))),
        (add_mask,     per_batch((1, s))),
        (kp["emb_g"],  resident(kp["emb_g"])),
        (kp["emb_b"],  resident(kp["emb_b"])),
        (kp["w_qkv"],  per_layer(kp["w_qkv"].shape[1:])),
        (kp["b_qkv"],  per_layer(kp["b_qkv"].shape[1:])),
        (kp["wo"],     per_layer(kp["wo"].shape[1:])),
        (kp["bo"],     per_layer(kp["bo"].shape[1:])),
        (kp["ln1_g"],  per_layer(kp["ln1_g"].shape[1:])),
        (kp["ln1_b"],  per_layer(kp["ln1_b"].shape[1:])),
        (kp["wi"],     per_layer(kp["wi"].shape[1:])),
        (kp["bi"],     per_layer(kp["bi"].shape[1:])),
        (kp["wf"],     per_layer(kp["wf"].shape[1:])),
        (kp["bf"],     per_layer(kp["bf"].shape[1:])),
        (kp["ln2_g"],  per_layer(kp["ln2_g"].shape[1:])),
        (kp["ln2_b"],  per_layer(kp["ln2_b"].shape[1:])),
        (kp["w_pool"], resident(kp["w_pool"])),
        (kp["b_pool"], resident(kp["b_pool"])),
        (kp["w_fc"],   resident(kp["w_fc"])),
        (kp["b_fc"],   resident(kp["b_fc"])),
    ]
    arrays = [a for a, _ in inputs]
    in_specs = [sp for _, sp in inputs]

    grid_spec = pltpu.PrefetchScalarGridSpec(
        num_scalar_prefetch=0,
        grid=(nbt, nl),                       # (parallel batch tiles, arbitrary layers)
        in_specs=in_specs,
        out_specs=pl.BlockSpec((bt, 1, e), lambda bi, l: (bi, 0, 0)),
        scratch_shapes=[pltpu.VMEM((bt * s, h), jnp.float32),    # x  (persists over layers)
                        pltpu.VMEM((bt * s, h), jnp.bfloat16),   # bf16 copy of x
                        pltpu.VMEM((bt * s, h), jnp.float32)],   # per-head context
    )

    # --- advisory cost estimate + VMEM budget for the streamed design ---
    fl_layer = (2 * b * s * h * 3 * h + 4 * b * nh * s * s * dh
                + 2 * b * s * h * h + 4 * b * s * h * inter)
    flops = nl * fl_layer + 2 * b * h * h + 2 * b * h * e
    transcendentals = nl * (b * nh * s * s + b * s * inter) + b * h
    layer_keys = ("w_qkv", "b_qkv", "wo", "bo", "ln1_g", "ln1_b",
                  "wi", "bi", "wf", "bf", "ln2_g", "ln2_b")
    w_bytes = sum(int(kp[k].size) * kp[k].dtype.itemsize for k in layer_keys)
    head_keys = ("emb_g", "emb_b", "w_pool", "b_pool", "w_fc", "b_fc")
    head_bytes = sum(int(kp[k].size) * kp[k].dtype.itemsize for k in head_keys)
    bytes_accessed = (w_bytes * nbt + head_bytes
                      + int(x_emb.size) * 4 + int(add_mask.size) * 4 + b * e * 4)
    act_bytes = bt * s * (h * (4 + 2 + 4) + inter * 4 + 3 * h * 4) + bt * e * 4
    res_bytes = (2 * (w_bytes // max(nl, 1)) + head_bytes + act_bytes
                 + (bt * s * h + bt * s) * 4)
    vmem_limit = int(min(max(4 * res_bytes, 32 * 1024 * 1024), 120 * 1024 * 1024))

    run_cfg = dict(cfg, batch_tile=bt, seq=s)
    out = pl.pallas_call(
        functools.partial(_encoder_kernel, cfg=run_cfg),
        out_shape=jax.ShapeDtypeStruct((b, 1, e), jnp.float32),
        grid_spec=grid_spec,
        compiler_params=pltpu.CompilerParams(
            dimension_semantics=("parallel", "arbitrary"),
            vmem_limit_bytes=vmem_limit),
        cost_estimate=pl.CostEstimate(
            flops=int(flops), transcendentals=int(transcendentals),
            bytes_accessed=int(bytes_accessed)),
    )(*arrays)
    return out.reshape(b, e)


# ----------------------------- model (glue) --------------------------------

CFG = dict(vocab=100, max_pos=16, hidden=32, heads=2, head_dim=16,
           layers=2, intermediate=64, embed_size=32, batch_tile=1)


def init_params(key, cfg):
    def nrm(k, shape):
        return 0.02 * jax.random.normal(k, shape, jnp.float32)

    keys = iter(jax.random.split(key, 64))
    h, it = cfg["hidden"], cfg["intermediate"]
    p = {
        "word_emb": nrm(next(keys), (cfg["vocab"], h)),
        "pos_emb": nrm(next(keys), (cfg["max_pos"], h)),
        "emb_ln_g": jnp.ones((h,), jnp.float32),
        "emb_ln_b": jnp.zeros((h,), jnp.float32),
        "layers": [],
        "w_pool": nrm(next(keys), (h, h)),
        "b_pool": jnp.zeros((h,), jnp.float32),
        "w_fc": nrm(next(keys), (h, cfg["embed_size"])),
        "b_fc": jnp.zeros((cfg["embed_size"],), jnp.float32),
    }
    for _ in range(cfg["layers"]):
        p["layers"].append({
            "wq": nrm(next(keys), (h, h)), "bq": jnp.zeros((h,), jnp.float32),
            "wk": nrm(next(keys), (h, h)), "bk": jnp.zeros((h,), jnp.float32),
            "wv": nrm(next(keys), (h, h)), "bv": jnp.zeros((h,), jnp.float32),
            "wo": nrm(next(keys), (h, h)), "bo": jnp.zeros((h,), jnp.float32),
            "ln1_g": jnp.ones((h,), jnp.float32), "ln1_b": jnp.zeros((h,), jnp.float32),
            "wi": nrm(next(keys), (h, it)), "bi": jnp.zeros((it,), jnp.float32),
            "wf": nrm(next(keys), (it, h)), "bf": jnp.zeros((h,), jnp.float32),
            "ln2_g": jnp.ones((h,), jnp.float32), "ln2_b": jnp.zeros((h,), jnp.float32),
        })
    return p


def prepare_kernel_params(params):
    """One-time packing: stack per-layer weights with a leading layer dim,
    fuse QKV, pre-shape biases/LN to (nl, 1, D), store matmul weights bf16."""
    bf16 = jnp.bfloat16
    L = params["layers"]

    def stk_w(name):
        return jnp.stack([lyr[name] for lyr in L], axis=0).astype(bf16)

    def stk_v(name):
        return jnp.stack([lyr[name] for lyr in L], axis=0)[:, None, :]  # (nl,1,D) f32

    w_qkv = jnp.stack(
        [jnp.concatenate([lyr["wq"], lyr["wk"], lyr["wv"]], axis=1) for lyr in L],
        axis=0).astype(bf16)
    b_qkv = jnp.stack(
        [jnp.concatenate([lyr["bq"], lyr["bk"], lyr["bv"]], axis=0) for lyr in L],
        axis=0)[:, None, :]

    return dict(
        emb_g=params["emb_ln_g"][None, :], emb_b=params["emb_ln_b"][None, :],
        w_qkv=w_qkv, b_qkv=b_qkv,
        wo=stk_w("wo"), bo=stk_v("bo"),
        ln1_g=stk_v("ln1_g"), ln1_b=stk_v("ln1_b"),
        wi=stk_w("wi"), bi=stk_v("bi"),
        wf=stk_w("wf"), bf=stk_v("bf"),
        ln2_g=stk_v("ln2_g"), ln2_b=stk_v("ln2_b"),
        w_pool=params["w_pool"].astype(bf16), b_pool=params["b_pool"][None, :],
        w_fc=params["w_fc"].astype(bf16), b_fc=params["b_fc"][None, :],
    )


def qst_encoder_forward(params, kernel_params, question, cfg=CFG):
    # forward(question): squeeze(1), encoder(...).pooler_output, dropout, fc
    input_ids = jnp.squeeze(question["input_ids"], axis=1)            # (B, S)
    attention_mask = jnp.squeeze(question["attention_mask"], axis=1)  # (B, S)
    b, s = input_ids.shape

    # embeddings (gather is glue; LayerNorm runs inside the fused kernel)
    # TODO(synk): RoBERTa's padding-aware position ids simplified to arange.
    pos_ids = jnp.arange(s, dtype=jnp.int32)
    x_emb = (jnp.take(params["word_emb"], input_ids, axis=0)
             + params["pos_emb"][pos_ids][None]).astype(jnp.float32)  # (B, S, H)

    # additive attention mask, pre-shaped (B, 1, S); broadcast once per layer in-kernel
    add_mask = ((1.0 - attention_mask.astype(jnp.float32)) * -1e9)[:, None, :]

    bt = min(cfg.get("batch_tile", 1), b)
    while b % bt != 0:
        bt -= 1
    run_cfg = dict(cfg, batch=b, seq=s, batch_tile=bt)
    return fused_qst_encoder(x_emb, add_mask, kernel_params, run_cfg)  # (B, E)


# --------------------------------- main -------------------------------------

if __name__ == "__main__":
    key = jax.random.PRNGKey(0)
    k_param, k_ids = jax.random.split(key)

    params = init_params(k_param, CFG)
    kernel_params = prepare_kernel_params(params)   # one-time packing

    B, S = 2, 8
    input_ids = jax.random.randint(k_ids, (B, 1, S), 0, CFG["vocab"], dtype=jnp.int32)
    attention_mask = jnp.ones((B, 1, S), jnp.int32)
    attention_mask = attention_mask.at[1, 0, 6:].set(0)   # some padding in batch 1

    question = {"input_ids": input_ids, "attention_mask": attention_mask}

    out = qst_encoder_forward(params, kernel_params, question)
    out = jax.block_until_ready(out)
    assert out.shape == (B, CFG["embed_size"]), out.shape
    assert jnp.all(jnp.isfinite(out))
    print("KERNEL_OK")
</pallas_src>

<mosaic_0001>
module attributes {stable_mosaic.version = 11 : i64} {
  func.func @_encoder_kernel(%arg0: i32, %arg1: i32, %arg2: memref<1x8x32xf32, #tpu.memory_space<vmem>>, %arg3: memref<1x1x8xf32, #tpu.memory_space<vmem>>, %arg4: memref<1x32xf32, #tpu.memory_space<vmem>>, %arg5: memref<1x32xf32, #tpu.memory_space<vmem>>, %arg6: memref<1x32x96xbf16, #tpu.memory_space<vmem>>, %arg7: memref<1x1x96xf32, #tpu.memory_space<vmem>>, %arg8: memref<1x32x32xbf16, #tpu.memory_space<vmem>>, %arg9: memref<1x1x32xf32, #tpu.memory_space<vmem>>, %arg10: memref<1x1x32xf32, #tpu.memory_space<vmem>>, %arg11: memref<1x1x32xf32, #tpu.memory_space<vmem>>, %arg12: memref<1x32x64xbf16, #tpu.memory_space<vmem>>, %arg13: memref<1x1x64xf32, #tpu.memory_space<vmem>>, %arg14: memref<1x64x32xbf16, #tpu.memory_space<vmem>>, %arg15: memref<1x1x32xf32, #tpu.memory_space<vmem>>, %arg16: memref<1x1x32xf32, #tpu.memory_space<vmem>>, %arg17: memref<1x1x32xf32, #tpu.memory_space<vmem>>, %arg18: memref<32x32xbf16, #tpu.memory_space<vmem>>, %arg19: memref<1x32xf32, #tpu.memory_space<vmem>>, %arg20: memref<32x32xbf16, #tpu.memory_space<vmem>>, %arg21: memref<1x32xf32, #tpu.memory_space<vmem>>, %arg22: memref<1x1x32xf32, #tpu.memory_space<vmem>>, %arg23: memref<8x32xf32, #tpu.memory_space<vmem>>, %arg24: memref<8x32xbf16, #tpu.memory_space<vmem>>, %arg25: memref<8x32xf32, #tpu.memory_space<vmem>>) attributes {dimension_semantics = [#tpu.dimension_semantics<parallel>, #tpu.dimension_semantics<arbitrary>], iteration_bounds = array<i64: 2, 2>, scalar_prefetch = 0 : i64, scratch_operands = 3 : i64, tpu.core_type = #tpu.core_type<tc>, window_params = [{transform_indices = @transform_0, window_bounds = array<i64: 1, 8, 32>}, {transform_indices = @transform_1, window_bounds = array<i64: 1, 1, 8>}, {pipeline_mode = #tpu.pipeline_mode<synchronous>, transform_indices = @transform_2, window_bounds = array<i64: 1, 32>}, {pipeline_mode = #tpu.pipeline_mode<synchronous>, transform_indices = @transform_3, window_bounds = array<i64: 1, 32>}, {transform_indices = @transform_4, window_bounds = array<i64: 1, 32, 96>}, {transform_indices = @transform_5, window_bounds = array<i64: 1, 1, 96>}, {transform_indices = @transform_6, window_bounds = array<i64: 1, 32, 32>}, {transform_indices = @transform_7, window_bounds = array<i64: 1, 1, 32>}, {transform_indices = @transform_8, window_bounds = array<i64: 1, 1, 32>}, {transform_indices = @transform_9, window_bounds = array<i64: 1, 1, 32>}, {transform_indices = @transform_10, window_bounds = array<i64: 1, 32, 64>}, {transform_indices = @transform_11, window_bounds = array<i64: 1, 1, 64>}, {transform_indices = @transform_12, window_bounds = array<i64: 1, 64, 32>}, {transform_indices = @transform_13, window_bounds = array<i64: 1, 1, 32>}, {transform_indices = @transform_14, window_bounds = array<i64: 1, 1, 32>}, {transform_indices = @transform_15, window_bounds = array<i64: 1, 1, 32>}, {pipeline_mode = #tpu.pipeline_mode<synchronous>, transform_indices = @transform_16, window_bounds = array<i64: 32, 32>}, {pipeline_mode = #tpu.pipeline_mode<synchronous>, transform_indices = @transform_17, window_bounds = array<i64: 1, 32>}, {pipeline_mode = #tpu.pipeline_mode<synchronous>, transform_indices = @transform_18, window_bounds = array<i64: 32, 32>}, {pipeline_mode = #tpu.pipeline_mode<synchronous>, transform_indices = @transform_19, window_bounds = array<i64: 1, 32>}, {transform_indices = @transform_20, window_bounds = array<i64: 1, 1, 32>}]} {
    %c0_i32 = arith.constant 0 : i32
    %0 = arith.cmpi eq, %arg1, %c0_i32 : i32
    %1 = arith.extui %0 : i1 to i32
    %c0_i32_0 = arith.constant 0 : i32
    %2 = arith.cmpi ne, %1, %c0_i32_0 : i32
    scf.if %2 {
      %c0_79 = arith.constant 0 : index
      %c0_80 = arith.constant 0 : index
      %c0_81 = arith.constant 0 : index
      %160 = vector.load %arg2[%c0_79, %c0_80, %c0_81] : memref<1x8x32xf32, #tpu.memory_space<vmem>>, vector<1x8x32xf32>
      %161 = vector.shape_cast %160 : vector<1x8x32xf32> to vector<8x32xf32>
      %c0_82 = arith.constant 0 : index
      %c0_83 = arith.constant 0 : index
      %162 = vector.load %arg4[%c0_82, %c0_83] : memref<1x32xf32, #tpu.memory_space<vmem>>, vector<1x32xf32>
      %c0_84 = arith.constant 0 : index
      %c0_85 = arith.constant 0 : index
      %163 = vector.load %arg5[%c0_84, %c0_85] : memref<1x32xf32, #tpu.memory_space<vmem>>, vector<1x32xf32>
      %cst_86 = arith.constant dense<0.000000e+00> : vector<8xf32>
      %164 = vector.multi_reduction <add>, %161, %cst_86 [1] : vector<8x32xf32> to vector<8xf32>
      %165 = vector.shape_cast %164 : vector<8xf32> to vector<8x1xf32>
      %cst_87 = arith.constant 3.200000e+01 : f32
      %166 = vector.broadcast %cst_87 : f32 to vector<8x1xf32>
      %167 = arith.divf %165, %166 : vector<8x1xf32>
      %168 = vector.broadcast %167 : vector<8x1xf32> to vector<8x32xf32>
      %169 = arith.subf %161, %168 : vector<8x32xf32>
      %170 = arith.mulf %169, %169 : vector<8x32xf32>
      %cst_88 = arith.constant dense<0.000000e+00> : vector<8xf32>
      %171 = vector.multi_reduction <add>, %170, %cst_88 [1] : vector<8x32xf32> to vector<8xf32>
      %172 = vector.shape_cast %171 : vector<8xf32> to vector<8x1xf32>
      %cst_89 = arith.constant 3.200000e+01 : f32
      %173 = vector.broadcast %cst_89 : f32 to vector<8x1xf32>
      %174 = arith.divf %172, %173 : vector<8x1xf32>
      %175 = vector.broadcast %167 : vector<8x1xf32> to vector<8x32xf32>
      %176 = arith.subf %161, %175 : vector<8x32xf32>
      %cst_90 = arith.constant 9.99999974E-6 : f32
      %177 = vector.broadcast %cst_90 : f32 to vector<8x1xf32>
      %178 = arith.addf %174, %177 : vector<8x1xf32>
      %179 = math.rsqrt %178 : vector<8x1xf32>
      %180 = vector.broadcast %179 : vector<8x1xf32> to vector<8x32xf32>
      %181 = arith.mulf %176, %180 : vector<8x32xf32>
      %182 = vector.broadcast %162 : vector<1x32xf32> to vector<8x32xf32>
      %183 = arith.mulf %181, %182 : vector<8x32xf32>
      %184 = vector.broadcast %163 : vector<1x32xf32> to vector<8x32xf32>
      %185 = arith.addf %183, %184 : vector<8x32xf32>
      %c0_91 = arith.constant 0 : index
      %c0_92 = arith.constant 0 : index
      %186 = vector.load %arg23[%c0_91, %c0_92] : memref<8x32xf32, #tpu.memory_space<vmem>>, vector<8x32xf32>
      tpu.vector_store %arg23[%c0_91, %c0_92], %185 {strides = array<i32>} : memref<8x32xf32, #tpu.memory_space<vmem>>, vector<8x32xf32>,
      %187 = arith.truncf %185 : vector<8x32xf32> to vector<8x32xbf16>
      %c0_93 = arith.constant 0 : index
      %c0_94 = arith.constant 0 : index
      %188 = vector.load %arg24[%c0_93, %c0_94] : memref<8x32xbf16, #tpu.memory_space<vmem>>, vector<8x32xbf16>
      tpu.vector_store %arg24[%c0_93, %c0_94], %187 {strides = array<i32>} : memref<8x32xbf16, #tpu.memory_space<vmem>>, vector<8x32xbf16>,
    } else {
    }
    %c0 = arith.constant 0 : index
    %c0_1 = arith.constant 0 : index
    %3 = vector.load %arg24[%c0, %c0_1] : memref<8x32xbf16, #tpu.memory_space<vmem>>, vector<8x32xbf16>
    %c0_2 = arith.constant 0 : index
    %c0_3 = arith.constant 0 : index
    %c0_4 = arith.constant 0 : index
    %4 = vector.load %arg6[%c0_2, %c0_3, %c0_4] : memref<1x32x96xbf16, #tpu.memory_space<vmem>>, vector<1x32x96xbf16>
    %5 = vector.shape_cast %4 : vector<1x32x96xbf16> to vector<32x96xbf16>
    %c0_5 = arith.constant 0 : index
    %c0_6 = arith.constant 0 : index
    %c0_7 = arith.constant 0 : index
    %6 = vector.load %arg7[%c0_5, %c0_6, %c0_7] : memref<1x1x96xf32, #tpu.memory_space<vmem>>, vector<1x1x96xf32>
    %7 = vector.shape_cast %6 : vector<1x1x96xf32> to vector<1x96xf32>
    %cst = arith.constant dense<0.000000e+00> : vector<8x96xf32>
    %8 = tpu.matmul %3, %5, %cst {dimension_numbers = #tpu.dot_dimension_numbers<[1], [0], [0], [1], [0, 0, 1, 1], [], []>} : vector<8x32xbf16>, vector<32x96xbf16>, vector<8x96xf32> -> vector<8x96xf32>
    %9 = vector.broadcast %7 : vector<1x96xf32> to vector<8x96xf32>
    %10 = arith.addf %8, %9 : vector<8x96xf32>
    %11 = vector.shape_cast %10 : vector<8x96xf32> to vector<1x8x96xf32>
    %12 = vector.extract_strided_slice %11 {offsets = [0, 0, 0], sizes = [1, 8, 32], strides = [1, 1, 1]} : vector<1x8x96xf32> to vector<1x8x32xf32>
    %cst_8 = arith.constant 2.500000e-01 : f32
    %13 = vector.broadcast %cst_8 : f32 to vector<1x8x32xf32>
    %14 = arith.mulf %12, %13 : vector<1x8x32xf32>
    %15 = arith.truncf %14 : vector<1x8x32xf32> to vector<1x8x32xbf16>
    %16 = vector.extract_strided_slice %11 {offsets = [0, 0, 32], sizes = [1, 8, 32], strides = [1, 1, 1]} : vector<1x8x96xf32> to vector<1x8x32xf32>
    %17 = arith.truncf %16 : vector<1x8x32xf32> to vector<1x8x32xbf16>
    %18 = vector.extract_strided_slice %11 {offsets = [0, 0, 64], sizes = [1, 8, 32], strides = [1, 1, 1]} : vector<1x8x96xf32> to vector<1x8x32xf32>
    %19 = arith.truncf %18 : vector<1x8x32xf32> to vector<1x8x32xbf16>
    %c0_9 = arith.constant 0 : index
    %c0_10 = arith.constant 0 : index
    %c0_11 = arith.constant 0 : index
    %20 = vector.load %arg3[%c0_9, %c0_10, %c0_11] : memref<1x1x8xf32, #tpu.memory_space<vmem>>, vector<1x1x8xf32>
    %21 = vector.shape_cast %20 : vector<1x1x8xf32> to vector<1x1x8xf32>
    %22 = vector.broadcast %21 : vector<1x1x8xf32> to vector<1x8x8xf32>
    %23 = vector.extract_strided_slice %15 {offsets = [0, 0, 0], sizes = [1, 8, 16], strides = [1, 1, 1]} : vector<1x8x32xbf16> to vector<1x8x16xbf16>
    %24 = vector.extract_strided_slice %17 {offsets = [0, 0, 0], sizes = [1, 8, 16], strides = [1, 1, 1]} : vector<1x8x32xbf16> to vector<1x8x16xbf16>
    "tpu.trace_start"() <{level = 10 : i32, message = "bqd,bkd->bqk"}> : () -> ()
    %cst_12 = arith.constant dense<0.000000e+00> : vector<1x8x8xf32>
    %25 = tpu.matmul %23, %24, %cst_12 {dimension_numbers = #tpu.dot_dimension_numbers<[2], [2], [1], [1], [0, 0, 0, 1, 1, 1], [0], [0]>} : vector<1x8x16xbf16>, vector<1x8x16xbf16>, vector<1x8x8xf32> -> vector<1x8x8xf32>
    "tpu.trace_stop"() : () -> ()
    %26 = arith.addf %25, %22 : vector<1x8x8xf32>
    %cst_13 = arith.constant dense<0xFF800000> : vector<1x8xf32>
    %27 = vector.multi_reduction <maximumf>, %26, %cst_13 [2] : vector<1x8x8xf32> to vector<1x8xf32>
    %28 = vector.shape_cast %27 : vector<1x8xf32> to vector<1x8x1xf32>
    %29 = vector.broadcast %28 : vector<1x8x1xf32> to vector<1x8x8xf32>
    %30 = arith.subf %26, %29 : vector<1x8x8xf32>
    %31 = math.exp %30 : vector<1x8x8xf32>
    %cst_14 = arith.constant dense<0.000000e+00> : vector<1x8xf32>
    %32 = vector.multi_reduction <add>, %31, %cst_14 [2] : vector<1x8x8xf32> to vector<1x8xf32>
    %33 = vector.shape_cast %32 : vector<1x8xf32> to vector<1x8x1xf32>
    %34 = tpu.reciprocal %33 {approx = true} : vector<1x8x1xf32> -> vector<1x8x1xf32>
    %35 = vector.broadcast %34 : vector<1x8x1xf32> to vector<1x8x8xf32>
    %36 = arith.mulf %31, %35 : vector<1x8x8xf32>
    %37 = arith.truncf %36 : vector<1x8x8xf32> to vector<1x8x8xbf16>
    %38 = vector.extract_strided_slice %19 {offsets = [0, 0, 0], sizes = [1, 8, 16], strides = [1, 1, 1]} : vector<1x8x32xbf16> to vector<1x8x16xbf16>
    "tpu.trace_start"() <{level = 10 : i32, message = "bqk,bkd->bqd"}> : () -> ()
    %cst_15 = arith.constant dense<0.000000e+00> : vector<1x8x16xf32>
    %39 = tpu.matmul %37, %38, %cst_15 {dimension_numbers = #tpu.dot_dimension_numbers<[2], [1], [1], [2], [0, 0, 0, 1, 1, 2], [0], [0]>} : vector<1x8x8xbf16>, vector<1x8x16xbf16>, vector<1x8x16xf32> -> vector<1x8x16xf32>
    "tpu.trace_stop"() : () -> ()
    %40 = vector.shape_cast %39 : vector<1x8x16xf32> to vector<8x16xf32>
    %c0_16 = arith.constant 0 : index
    %c0_17 = arith.constant 0 : index
    %41 = vector.load %arg25[%c0_16, %c0_17] : memref<8x32xf32, #tpu.memory_space<vmem>>, vector<8x16xf32>
    tpu.vector_store %arg25[%c0_16, %c0_17], %40 {strides = array<i32>} : memref<8x32xf32, #tpu.memory_space<vmem>>, vector<8x16xf32>,
    %42 = vector.extract_strided_slice %15 {offsets = [0, 0, 16], sizes = [1, 8, 16], strides = [1, 1, 1]} : vector<1x8x32xbf16> to vector<1x8x16xbf16>
    %43 = vector.extract_strided_slice %17 {offsets = [0, 0, 16], sizes = [1, 8, 16], strides = [1, 1, 1]} : vector<1x8x32xbf16> to vector<1x8x16xbf16>
    "tpu.trace_start"() <{level = 10 : i32, message = "bqd,bkd->bqk"}> : () -> ()
    %cst_18 = arith.constant dense<0.000000e+00> : vector<1x8x8xf32>
    %44 = tpu.matmul %42, %43, %cst_18 {dimension_numbers = #tpu.dot_dimension_numbers<[2], [2], [1], [1], [0, 0, 0, 1, 1, 1], [0], [0]>} : vector<1x8x16xbf16>, vector<1x8x16xbf16>, vector<1x8x8xf32> -> vector<1x8x8xf32>
    "tpu.trace_stop"() : () -> ()
    %45 = arith.addf %44, %22 : vector<1x8x8xf32>
    %cst_19 = arith.constant dense<0xFF800000> : vector<1x8xf32>
    %46 = vector.multi_reduction <maximumf>, %45, %cst_19 [2] : vector<1x8x8xf32> to vector<1x8xf32>
    %47 = vector.shape_cast %46 : vector<1x8xf32> to vector<1x8x1xf32>
    %48 = vector.broadcast %47 : vector<1x8x1xf32> to vector<1x8x8xf32>
    %49 = arith.subf %45, %48 : vector<1x8x8xf32>
    %50 = math.exp %49 : vector<1x8x8xf32>
    %cst_20 = arith.constant dense<0.000000e+00> : vector<1x8xf32>
    %51 = vector.multi_reduction <add>, %50, %cst_20 [2] : vector<1x8x8xf32> to vector<1x8xf32>
    %52 = vector.shape_cast %51 : vector<1x8xf32> to vector<1x8x1xf32>
    %53 = tpu.reciprocal %52 {approx = true} : vector<1x8x1xf32> -> vector<1x8x1xf32>
    %54 = vector.broadcast %53 : vector<1x8x1xf32> to vector<1x8x8xf32>
    %55 = arith.mulf %50, %54 : vector<1x8x8xf32>
    %56 = arith.truncf %55 : vector<1x8x8xf32> to vector<1x8x8xbf16>
    %57 = vector.extract_strided_slice %19 {offsets = [0, 0, 16], sizes = [1, 8, 16], strides = [1, 1, 1]} : vector<1x8x32xbf16> to vector<1x8x16xbf16>
    "tpu.trace_start"() <{level = 10 : i32, message = "bqk,bkd->bqd"}> : () -> ()
    %cst_21 = arith.constant dense<0.000000e+00> : vector<1x8x16xf32>
    %58 = tpu.matmul %56, %57, %cst_21 {dimension_numbers = #tpu.dot_dimension_numbers<[2], [1], [1], [2], [0, 0, 0, 1, 1, 2], [0], [0]>} : vector<1x8x8xbf16>, vector<1x8x16xbf16>, vector<1x8x16xf32> -> vector<1x8x16xf32>
    "tpu.trace_stop"() : () -> ()
    %59 = vector.shape_cast %58 : vector<1x8x16xf32> to vector<8x16xf32>
    %c0_22 = arith.constant 0 : index
    %c16 = arith.constant 16 : index
    %60 = vector.load %arg25[%c0_22, %c16] : memref<8x32xf32, #tpu.memory_space<vmem>>, vector<8x16xf32>
    tpu.vector_store %arg25[%c0_22, %c16], %59 {strides = array<i32>} : memref<8x32xf32, #tpu.memory_space<vmem>>, vector<8x16xf32>,
    %c0_23 = arith.constant 0 : index
    %c0_24 = arith.constant 0 : index
    %61 = vector.load %arg25[%c0_23, %c0_24] : memref<8x32xf32, #tpu.memory_space<vmem>>, vector<8x32xf32>
    %62 = arith.truncf %61 : vector<8x32xf32> to vector<8x32xbf16>
    %c0_25 = arith.constant 0 : index
    %c0_26 = arith.constant 0 : index
    %c0_27 = arith.constant 0 : index
    %63 = vector.load %arg8[%c0_25, %c0_26, %c0_27] : memref<1x32x32xbf16, #tpu.memory_space<vmem>>, vector<1x32x32xbf16>
    %64 = vector.shape_cast %63 : vector<1x32x32xbf16> to vector<32x32xbf16>
    %c0_28 = arith.constant 0 : index
    %c0_29 = arith.constant 0 : index
    %c0_30 = arith.constant 0 : index
    %65 = vector.load %arg9[%c0_28, %c0_29, %c0_30] : memref<1x1x32xf32, #tpu.memory_space<vmem>>, vector<1x1x32xf32>
    %66 = vector.shape_cast %65 : vector<1x1x32xf32> to vector<1x32xf32>
    %cst_31 = arith.constant dense<0.000000e+00> : vector<8x32xf32>
    %67 = tpu.matmul %62, %64, %cst_31 {dimension_numbers = #tpu.dot_dimension_numbers<[1], [0], [0], [1], [0, 0, 1, 1], [], []>} : vector<8x32xbf16>, vector<32x32xbf16>, vector<8x32xf32> -> vector<8x32xf32>
    %68 = vector.broadcast %66 : vector<1x32xf32> to vector<8x32xf32>
    %69 = arith.addf %67, %68 : vector<8x32xf32>
    %c0_32 = arith.constant 0 : index
    %c0_33 = arith.constant 0 : index
    %70 = vector.load %arg23[%c0_32, %c0_33] : memref<8x32xf32, #tpu.memory_space<vmem>>, vector<8x32xf32>
    %71 = arith.addf %70, %69 : vector<8x32xf32>
    %c0_34 = arith.constant 0 : index
    %c0_35 = arith.constant 0 : index
    %c0_36 = arith.constant 0 : index
    %72 = vector.load %arg10[%c0_34, %c0_35, %c0_36] : memref<1x1x32xf32, #tpu.memory_space<vmem>>, vector<1x1x32xf32>
    %73 = vector.shape_cast %72 : vector<1x1x32xf32> to vector<1x32xf32>
    %c0_37 = arith.constant 0 : index
    %c0_38 = arith.constant 0 : index
    %c0_39 = arith.constant 0 : index
    %74 = vector.load %arg11[%c0_37, %c0_38, %c0_39] : memref<1x1x32xf32, #tpu.memory_space<vmem>>, vector<1x1x32xf32>
    %75 = vector.shape_cast %74 : vector<1x1x32xf32> to vector<1x32xf32>
    %cst_40 = arith.constant dense<0.000000e+00> : vector<8xf32>
    %76 = vector.multi_reduction <add>, %71, %cst_40 [1] : vector<8x32xf32> to vector<8xf32>
    %77 = vector.shape_cast %76 : vector<8xf32> to vector<8x1xf32>
    %cst_41 = arith.constant 3.200000e+01 : f32
    %78 = vector.broadcast %cst_41 : f32 to vector<8x1xf32>
    %79 = arith.divf %77, %78 : vector<8x1xf32>
    %80 = vector.broadcast %79 : vector<8x1xf32> to vector<8x32xf32>
    %81 = arith.subf %71, %80 : vector<8x32xf32>
    %82 = arith.mulf %81, %81 : vector<8x32xf32>
    %cst_42 = arith.constant dense<0.000000e+00> : vector<8xf32>
    %83 = vector.multi_reduction <add>, %82, %cst_42 [1] : vector<8x32xf32> to vector<8xf32>
    %84 = vector.shape_cast %83 : vector<8xf32> to vector<8x1xf32>
    %cst_43 = arith.constant 3.200000e+01 : f32
    %85 = vector.broadcast %cst_43 : f32 to vector<8x1xf32>
    %86 = arith.divf %84, %85 : vector<8x1xf32>
    %87 = vector.broadcast %79 : vector<8x1xf32> to vector<8x32xf32>
    %88 = arith.subf %71, %87 : vector<8x32xf32>
    %cst_44 = arith.constant 9.99999974E-6 : f32
    %89 = vector.broadcast %cst_44 : f32 to vector<8x1xf32>
    %90 = arith.addf %86, %89 : vector<8x1xf32>
    %91 = math.rsqrt %90 : vector<8x1xf32>
    %92 = vector.broadcast %91 : vector<8x1xf32> to vector<8x32xf32>
    %93 = arith.mulf %88, %92 : vector<8x32xf32>
    %94 = vector.broadcast %73 : vector<1x32xf32> to vector<8x32xf32>
    %95 = arith.mulf %93, %94 : vector<8x32xf32>
    %96 = vector.broadcast %75 : vector<1x32xf32> to vector<8x32xf32>
    %97 = arith.addf %95, %96 : vector<8x32xf32>
    %98 = arith.truncf %97 : vector<8x32xf32> to vector<8x32xbf16>
    %c0_45 = arith.constant 0 : index
    %c0_46 = arith.constant 0 : index
    %c0_47 = arith.constant 0 : index
    %99 = vector.load %arg12[%c0_45, %c0_46, %c0_47] : memref<1x32x64xbf16, #tpu.memory_space<vmem>>, vector<1x32x64xbf16>
    %100 = vector.shape_cast %99 : vector<1x32x64xbf16> to vector<32x64xbf16>
    %c0_48 = arith.constant 0 : index
    %c0_49 = arith.constant 0 : index
    %c0_50 = arith.constant 0 : index
    %101 = vector.load %arg13[%c0_48, %c0_49, %c0_50] : memref<1x1x64xf32, #tpu.memory_space<vmem>>, vector<1x1x64xf32>
    %102 = vector.shape_cast %101 : vector<1x1x64xf32> to vector<1x64xf32>
    %cst_51 = arith.constant dense<0.000000e+00> : vector<8x64xf32>
    %103 = tpu.matmul %98, %100, %cst_51 {dimension_numbers = #tpu.dot_dimension_numbers<[1], [0], [0], [1], [0, 0, 1, 1], [], []>} : vector<8x32xbf16>, vector<32x64xbf16>, vector<8x64xf32> -> vector<8x64xf32>
    %104 = vector.broadcast %102 : vector<1x64xf32> to vector<8x64xf32>
    %105 = arith.addf %103, %104 : vector<8x64xf32>
    %106 = arith.mulf %105, %105 : vector<8x64xf32>
    %107 = arith.mulf %105, %106 : vector<8x64xf32>
    %cst_52 = arith.constant 4.471500e-02 : f32
    %108 = vector.broadcast %cst_52 : f32 to vector<8x64xf32>
    %109 = arith.mulf %108, %107 : vector<8x64xf32>
    %110 = arith.addf %105, %109 : vector<8x64xf32>
    %cst_53 = arith.constant 0.797884583 : f32
    %111 = vector.broadcast %cst_53 : f32 to vector<8x64xf32>
    %112 = arith.mulf %111, %110 : vector<8x64xf32>
    %113 = math.tanh %112 : vector<8x64xf32>
    %cst_54 = arith.constant 1.000000e+00 : f32
    %114 = vector.broadcast %cst_54 : f32 to vector<8x64xf32>
    %115 = arith.addf %114, %113 : vector<8x64xf32>
    %cst_55 = arith.constant 5.000000e-01 : f32
    %116 = vector.broadcast %cst_55 : f32 to vector<8x64xf32>
    %117 = arith.mulf %116, %115 : vector<8x64xf32>
    %118 = arith.mulf %105, %117 : vector<8x64xf32>
    %119 = arith.truncf %118 : vector<8x64xf32> to vector<8x64xbf16>
    %c0_56 = arith.constant 0 : index
    %c0_57 = arith.constant 0 : index
    %c0_58 = arith.constant 0 : index
    %120 = vector.load %arg14[%c0_56, %c0_57, %c0_58] : memref<1x64x32xbf16, #tpu.memory_space<vmem>>, vector<1x64x32xbf16>
    %121 = vector.shape_cast %120 : vector<1x64x32xbf16> to vector<64x32xbf16>
    %c0_59 = arith.constant 0 : index
    %c0_60 = arith.constant 0 : index
    %c0_61 = arith.constant 0 : index
    %122 = vector.load %arg15[%c0_59, %c0_60, %c0_61] : memref<1x1x32xf32, #tpu.memory_space<vmem>>, vector<1x1x32xf32>
    %123 = vector.shape_cast %122 : vector<1x1x32xf32> to vector<1x32xf32>
    %cst_62 = arith.constant dense<0.000000e+00> : vector<8x32xf32>
    %124 = tpu.matmul %119, %121, %cst_62 {dimension_numbers = #tpu.dot_dimension_numbers<[1], [0], [0], [1], [0, 0, 1, 1], [], []>} : vector<8x64xbf16>, vector<64x32xbf16>, vector<8x32xf32> -> vector<8x32xf32>
    %125 = vector.broadcast %123 : vector<1x32xf32> to vector<8x32xf32>
    %126 = arith.addf %124, %125 : vector<8x32xf32>
    %127 = arith.addf %97, %126 : vector<8x32xf32>
    %c0_63 = arith.constant 0 : index
    %c0_64 = arith.constant 0 : index
    %c0_65 = arith.constant 0 : index
    %128 = vector.load %arg16[%c0_63, %c0_64, %c0_65] : memref<1x1x32xf32, #tpu.memory_space<vmem>>, vector<1x1x32xf32>
    %129 = vector.shape_cast %128 : vector<1x1x32xf32> to vector<1x32xf32>
    %c0_66 = arith.constant 0 : index
    %c0_67 = arith.constant 0 : index
    %c0_68 = arith.constant 0 : index
    %130 = vector.load %arg17[%c0_66, %c0_67, %c0_68] : memref<1x1x32xf32, #tpu.memory_space<vmem>>, vector<1x1x32xf32>
    %131 = vector.shape_cast %130 : vector<1x1x32xf32> to vector<1x32xf32>
    %cst_69 = arith.constant dense<0.000000e+00> : vector<8xf32>
    %132 = vector.multi_reduction <add>, %127, %cst_69 [1] : vector<8x32xf32> to vector<8xf32>
    %133 = vector.shape_cast %132 : vector<8xf32> to vector<8x1xf32>
    %cst_70 = arith.constant 3.200000e+01 : f32
    %134 = vector.broadcast %cst_70 : f32 to vector<8x1xf32>
    %135 = arith.divf %133, %134 : vector<8x1xf32>
    %136 = vector.broadcast %135 : vector<8x1xf32> to vector<8x32xf32>
    %137 = arith.subf %127, %136 : vector<8x32xf32>
    %138 = arith.mulf %137, %137 : vector<8x32xf32>
    %cst_71 = arith.constant dense<0.000000e+00> : vector<8xf32>
    %139 = vector.multi_reduction <add>, %138, %cst_71 [1] : vector<8x32xf32> to vector<8xf32>
    %140 = vector.shape_cast %139 : vector<8xf32> to vector<8x1xf32>
    %cst_72 = arith.constant 3.200000e+01 : f32
    %141 = vector.broadcast %cst_72 : f32 to vector<8x1xf32>
    %142 = arith.divf %140, %141 : vector<8x1xf32>
    %143 = vector.broadcast %135 : vector<8x1xf32> to vector<8x32xf32>
    %144 = arith.subf %127, %143 : vector<8x32xf32>
    %cst_73 = arith.constant 9.99999974E-6 : f32
    %145 = vector.broadcast %cst_73 : f32 to vector<8x1xf32>
    %146 = arith.addf %142, %145 : vector<8x1xf32>
    %147 = math.rsqrt %146 : vector<8x1xf32>
    %148 = vector.broadcast %147 : vector<8x1xf32> to vector<8x32xf32>
    %149 = arith.mulf %144, %148 : vector<8x32xf32>
    %150 = vector.broadcast %129 : vector<1x32xf32> to vector<8x32xf32>
    %151 = arith.mulf %149, %150 : vector<8x32xf32>
    %152 = vector.broadcast %131 : vector<1x32xf32> to vector<8x32xf32>
    %153 = arith.addf %151, %152 : vector<8x32xf32>
    %c0_74 = arith.constant 0 : index
    %c0_75 = arith.constant 0 : index
    %154 = vector.load %arg23[%c0_74, %c0_75] : memref<8x32xf32, #tpu.memory_space<vmem>>, vector<8x32xf32>
    tpu.vector_store %arg23[%c0_74, %c0_75], %153 {strides = array<i32>} : memref<8x32xf32, #tpu.memory_space<vmem>>, vector<8x32xf32>,
    %155 = arith.truncf %153 : vector<8x32xf32> to vector<8x32xbf16>
    %c0_76 = arith.constant 0 : index
    %c0_77 = arith.constant 0 : index
    %156 = vector.load %arg24[%c0_76, %c0_77] : memref<8x32xbf16, #tpu.memory_space<vmem>>, vector<8x32xbf16>
    tpu.vector_store %arg24[%c0_76, %c0_77], %155 {strides = array<i32>} : memref<8x32xbf16, #tpu.memory_space<vmem>>, vector<8x32xbf16>,
    %c1_i32 = arith.constant 1 : i32
    %157 = arith.cmpi eq, %arg1, %c1_i32 : i32
    %158 = arith.extui %157 : i1 to i32
    %c0_i32_78 = arith.constant 0 : i32
    %159 = arith.cmpi ne, %158, %c0_i32_78 : i32
    scf.if %159 {
      %c0_79 = arith.constant 0 : index
      %c0_80 = arith.constant 0 : index
      %160 = tpu.strided_load %arg23[%c0_79, %c0_80] {strides = array<i32: 8, 1>} : memref<8x32xf32, #tpu.memory_space<vmem>>, vector<1x32xf32>
      %161 = arith.truncf %160 : vector<1x32xf32> to vector<1x32xbf16>
      %c0_81 = arith.constant 0 : index
      %c0_82 = arith.constant 0 : index
      %162 = vector.load %arg18[%c0_81, %c0_82] : memref<32x32xbf16, #tpu.memory_space<vmem>>, vector<32x32xbf16>
      %c0_83 = arith.constant 0 : index
      %c0_84 = arith.constant 0 : index
      %163 = vector.load %arg19[%c0_83, %c0_84] : memref<1x32xf32, #tpu.memory_space<vmem>>, vector<1x32xf32>
      %cst_85 = arith.constant dense<0.000000e+00> : vector<1x32xf32>
      %164 = tpu.matmul %161, %162, %cst_85 {dimension_numbers = #tpu.dot_dimension_numbers<[1], [0], [0], [1], [0, 0, 1, 1], [], []>} : vector<1x32xbf16>, vector<32x32xbf16>, vector<1x32xf32> -> vector<1x32xf32>
      %165 = arith.addf %164, %163 : vector<1x32xf32>
      %166 = math.tanh %165 : vector<1x32xf32>
      %167 = arith.truncf %166 : vector<1x32xf32> to vector<1x32xbf16>
      %c0_86 = arith.constant 0 : index
      %c0_87 = arith.constant 0 : index
      %168 = vector.load %arg20[%c0_86, %c0_87] : memref<32x32xbf16, #tpu.memory_space<vmem>>, vector<32x32xbf16>
      %c0_88 = arith.constant 0 : index
      %c0_89 = arith.constant 0 : index
      %169 = vector.load %arg21[%c0_88, %c0_89] : memref<1x32xf32, #tpu.memory_space<vmem>>, vector<1x32xf32>
      %cst_90 = arith.constant dense<0.000000e+00> : vector<1x32xf32>
      %170 = tpu.matmul %167, %168, %cst_90 {dimension_numbers = #tpu.dot_dimension_numbers<[1], [0], [0], [1], [0, 0, 1, 1], [], []>} : vector<1x32xbf16>, vector<32x32xbf16>, vector<1x32xf32> -> vector<1x32xf32>
      %171 = arith.addf %170, %169 : vector<1x32xf32>
      %172 = vector.shape_cast %171 : vector<1x32xf32> to vector<1x1x32xf32>
      %c0_91 = arith.constant 0 : index
      %c0_92 = arith.constant 0 : index
      %c0_93 = arith.constant 0 : index
      %173 = vector.load %arg22[%c0_91, %c0_92, %c0_93] : memref<1x1x32xf32, #tpu.memory_space<vmem>>, vector<1x1x32xf32>
      tpu.vector_store %arg22[%c0_91, %c0_92, %c0_93], %172 {strides = array<i32>} : memref<1x1x32xf32, #tpu.memory_space<vmem>>, vector<1x1x32xf32>,
    } else {
    }
    return
  }
  func.func @transform_0(%arg0: i32, %arg1: i32) -> (i32, i32, i32) {
    %c0_i32 = arith.constant 0 : i32
    %c0_i32_0 = arith.constant 0 : i32
    %c0_i32_1 = arith.constant 0 : i32
    return %arg0, %c0_i32, %c0_i32_0 : i32, i32, i32
  }
  func.func @transform_1(%arg0: i32, %arg1: i32) -> (i32, i32, i32) {
    %c0_i32 = arith.constant 0 : i32
    %c0_i32_0 = arith.constant 0 : i32
    %c0_i32_1 = arith.constant 0 : i32
    return %arg0, %c0_i32, %c0_i32_0 : i32, i32, i32
  }
  func.func @transform_2(%arg0: i32, %arg1: i32) -> (i32, i32) {
    %c0_i32 = arith.constant 0 : i32
    %c0_i32_0 = arith.constant 0 : i32
    %c0_i32_1 = arith.constant 0 : i32
    return %c0_i32, %c0_i32_0 : i32, i32
  }
  func.func @transform_3(%arg0: i32, %arg1: i32) -> (i32, i32) {
    %c0_i32 = arith.constant 0 : i32
    %c0_i32_0 = arith.constant 0 : i32
    %c0_i32_1 = arith.constant 0 : i32
    return %c0_i32, %c0_i32_0 : i32, i32
  }
  func.func @transform_4(%arg0: i32, %arg1: i32) -> (i32, i32, i32) {
    %c0_i32 = arith.constant 0 : i32
    %c0_i32_0 = arith.constant 0 : i32
    %c0_i32_1 = arith.constant 0 : i32
    return %arg1, %c0_i32, %c0_i32_0 : i32, i32, i32
  }
  func.func @transform_5(%arg0: i32, %arg1: i32) -> (i32, i32, i32) {
    %c0_i32 = arith.constant 0 : i32
    %c0_i32_0 = arith.constant 0 : i32
    %c0_i32_1 = arith.constant 0 : i32
    return %arg1, %c0_i32, %c0_i32_0 : i32, i32, i32
  }
  func.func @transform_6(%arg0: i32, %arg1: i32) -> (i32, i32, i32) {
    %c0_i32 = arith.constant 0 : i32
    %c0_i32_0 = arith.constant 0 : i32
    %c0_i32_1 = arith.constant 0 : i32
    return %arg1, %c0_i32, %c0_i32_0 : i32, i32, i32
  }
  func.func @transform_7(%arg0: i32, %arg1: i32) -> (i32, i32, i32) {
    %c0_i32 = arith.constant 0 : i32
    %c0_i32_0 = arith.constant 0 : i32
    %c0_i32_1 = arith.constant 0 : i32
    return %arg1, %c0_i32, %c0_i32_0 : i32, i32, i32
  }
  func.func @transform_8(%arg0: i32, %arg1: i32) -> (i32, i32, i32) {
    %c0_i32 = arith.constant 0 : i32
    %c0_i32_0 = arith.constant 0 : i32
    %c0_i32_1 = arith.constant 0 : i32
    return %arg1, %c0_i32, %c0_i32_0 : i32, i32, i32
  }
  func.func @transform_9(%arg0: i32, %arg1: i32) -> (i32, i32, i32) {
    %c0_i32 = arith.constant 0 : i32
    %c0_i32_0 = arith.constant 0 : i32
    %c0_i32_1 = arith.constant 0 : i32
    return %arg1, %c0_i32, %c0_i32_0 : i32, i32, i32
  }
  func.func @transform_10(%arg0: i32, %arg1: i32) -> (i32, i32, i32) {
    %c0_i32 = arith.constant 0 : i32
    %c0_i32_0 = arith.constant 0 : i32
    %c0_i32_1 = arith.constant 0 : i32
    return %arg1, %c0_i32, %c0_i32_0 : i32, i32, i32
  }
  func.func @transform_11(%arg0: i32, %arg1: i32) -> (i32, i32, i32) {
    %c0_i32 = arith.constant 0 : i32
    %c0_i32_0 = arith.constant 0 : i32
    %c0_i32_1 = arith.constant 0 : i32
    return %arg1, %c0_i32, %c0_i32_0 : i32, i32, i32
  }
  func.func @transform_12(%arg0: i32, %arg1: i32) -> (i32, i32, i32) {
    %c0_i32 = arith.constant 0 : i32
    %c0_i32_0 = arith.constant 0 : i32
    %c0_i32_1 = arith.constant 0 : i32
    return %arg1, %c0_i32, %c0_i32_0 : i32, i32, i32
  }
  func.func @transform_13(%arg0: i32, %arg1: i32) -> (i32, i32, i32) {
    %c0_i32 = arith.constant 0 : i32
    %c0_i32_0 = arith.constant 0 : i32
    %c0_i32_1 = arith.constant 0 : i32
    return %arg1, %c0_i32, %c0_i32_0 : i32, i32, i32
  }
  func.func @transform_14(%arg0: i32, %arg1: i32) -> (i32, i32, i32) {
    %c0_i32 = arith.constant 0 : i32
    %c0_i32_0 = arith.constant 0 : i32
    %c0_i32_1 = arith.constant 0 : i32
    return %arg1, %c0_i32, %c0_i32_0 : i32, i32, i32
  }
  func.func @transform_15(%arg0: i32, %arg1: i32) -> (i32, i32, i32) {
    %c0_i32 = arith.constant 0 : i32
    %c0_i32_0 = arith.constant 0 : i32
    %c0_i32_1 = arith.constant 0 : i32
    return %arg1, %c0_i32, %c0_i32_0 : i32, i32, i32
  }
  func.func @transform_16(%arg0: i32, %arg1: i32) -> (i32, i32) {
    %c0_i32 = arith.constant 0 : i32
    %c0_i32_0 = arith.constant 0 : i32
    %c0_i32_1 = arith.constant 0 : i32
    return %c0_i32, %c0_i32_0 : i32, i32
  }
  func.func @transform_17(%arg0: i32, %arg1: i32) -> (i32, i32) {
    %c0_i32 = arith.constant 0 : i32
    %c0_i32_0 = arith.constant 0 : i32
    %c0_i32_1 = arith.constant 0 : i32
    return %c0_i32, %c0_i32_0 : i32, i32
  }
  func.func @transform_18(%arg0: i32, %arg1: i32) -> (i32, i32) {
    %c0_i32 = arith.constant 0 : i32
    %c0_i32_0 = arith.constant 0 : i32
    %c0_i32_1 = arith.constant 0 : i32
    return %c0_i32, %c0_i32_0 : i32, i32
  }
  func.func @transform_19(%arg0: i32, %arg1: i32) -> (i32, i32) {
    %c0_i32 = arith.constant 0 : i32
    %c0_i32_0 = arith.constant 0 : i32
    %c0_i32_1 = arith.constant 0 : i32
    return %c0_i32, %c0_i32_0 : i32, i32
  }
  func.func @transform_20(%arg0: i32, %arg1: i32) -> (i32, i32, i32) {
    %c0_i32 = arith.constant 0 : i32
    %c0_i32_0 = arith.constant 0 : i32
    %c0_i32_1 = arith.constant 0 : i32
    return %arg0, %c0_i32, %c0_i32_0 : i32, i32, i32
  }
}

</mosaic_0001>

<bundles_post_ra>
// kernel: tpu_custom_call.1
= control target key start
LH: loop header
LB: loop body
LE: loop exit
PB: predicated region body
PF: predicated region fallthrough
CT: control target
= control target key end

     0   :  { %s3459_s0 = inlined_call_operand.hbm [shape: f32[2,8,32], index: 0, kind: input, shape index: {}]   ;;  %s3460_s1 = inlined_call_operand.hbm [shape: f32[2,1,8], index: 1, kind: input, shape index: {}]   ;;  %s3461_s2 = inlined_call_operand.vmem [shape: f32[1,32], index: 2, kind: input, shape index: {}]   ;;  %s3462_s3 = inlined_call_operand.hbm [shape: f32[1,32], index: 3, kind: input, shape index: {}]   ;;  %s3463_s4 = inlined_call_operand.vmem [shape: bf16[2,32,96], index: 4, kind: input, shape index: {}]   ;;  %s3464_s5 = inlined_call_operand.hbm [shape: f32[2,1,96], index: 5, kind: input, shape index: {}]   ;;  %s3465_s6 = inlined_call_operand.vmem [shape: bf16[2,32,32], index: 6, kind: input, shape index: {}]   ;;  %s3466_s7 = inlined_call_operand.hbm [shape: f32[2,1,32], index: 7, kind: input, shape index: {}]   ;;  %s3467_s8 = inlined_call_operand.hbm [shape: f32[2,1,32], index: 8, kind: input, shape index: {}]   ;;  %s3468_s9 = inlined_call_operand.hbm [shape: f32[2,1,32], index: 9, kind: input, shape index: {}]   ;;  %s3469_s10 = inlined_call_operand.vmem [shape: bf16[2,32,64], index: 10, kind: input, shape index: {}]   ;;  %s3470_s11 = inlined_call_operand.hbm [shape: f32[2,1,64], index: 11, kind: input, shape index: {}]   ;;  %s3471_s12 = inlined_call_operand.vmem [shape: bf16[2,64,32], index: 12, kind: input, shape index: {}]   ;;  %s3472_s13 = inlined_call_operand.hbm [shape: f32[2,1,32], index: 13, kind: input, shape index: {}]   ;;  %s3473_s14 = inlined_call_operand.hbm [shape: f32[2,1,32], index: 14, kind: input, shape index: {}]   ;;  %s3474_s15 = inlined_call_operand.hbm [shape: f32[2,1,32], index: 15, kind: input, shape index: {}]   ;;  %s3475_s16 = inlined_call_operand.hbm [shape: bf16[32,32], index: 16, kind: input, shape index: {}]   ;;  %s3476_s17 = inlined_call_operand.hbm [shape: f32[1,32], index: 17, kind: input, shape index: {}]   ;;  %s3477_s18 = inlined_call_operand.vmem [shape: bf16[32,32], index: 18, kind: input, shape index: {}]   ;;  %s3478_s19 = inlined_call_operand.hbm [shape: f32[1,32], index: 19, kind: input, shape index: {}]   ;;  %s3479_s20 = inlined_call_operand.hbm [shape: f32[2,1,32], index: 20, kind: output, shape index: {}]  }
   0x1   :  { %3495 = sst [smem:[#allocation49_spill]] %s3459_s0 }
   0x2   :  { %3496 = sst [smem:[#allocation50_spill]] %s3460_s1 }
   0x3   :  { %3497 = sst [smem:[#allocation51_spill]] %s3461_s2 }
   0x4   :  { %3498 = sst [smem:[#allocation52_spill]] %s3462_s3 }
   0x5   :  { %3499 = sst [smem:[#allocation53_spill]] %s3463_s4 }
   0x6   :  { %3500 = sst [smem:[#allocation54_spill]] %s3464_s5 }
   0x7   :  { %3501 = sst [smem:[#allocation55_spill]] %s3465_s6 }
   0x8   :  { %3502 = sst [smem:[#allocation56_spill]] %s3466_s7 }
   0x9   :  { %3503 = sst [smem:[#allocation57_spill]] %s3467_s8 }
   0xa   :  { %3504 = sst [smem:[#allocation58_spill]] %s3468_s9 }
   0xb   :  { %3505 = sst [smem:[#allocation59_spill]] %s3469_s10 }
   0xc   :  { %3506 = sst [smem:[#allocation60_spill]] %s3470_s11 }
   0xd   :  { %3507 = sst [smem:[#allocation61_spill]] %s3471_s12 }
   0xe   :  { %3508 = sst [smem:[#allocation62_spill]] %s3472_s13 }
   0xf   :  { %3509 = sst [smem:[#allocation63_spill]] %s3473_s14 }
  0x10   :  { %3510 = sst [smem:[#allocation64_spill]] %s3474_s15 }
  0x11   :  { %3511 = sst [smem:[#allocation65_spill]] %s3475_s16 }
  0x12   :  { %3512 = sst [smem:[#allocation66_spill]] %s3476_s17 }
  0x13   :  { %3513 = sst [smem:[#allocation67_spill]] %s3477_s18 }
  0x14   :  { %3514 = sst [smem:[#allocation68_spill]] %s3478_s19 }
  0x15   :  { %3515 = sst [smem:[#allocation69_spill]] %s3479_s20 }
  0x16   :  { %25 = vsyncpa [#allocation6], 0 }
  0x17   :  { %27 = vsyncpa [#allocation6 + $0x1], 0 }
  0x18   :  { %28 = vsyncpa [#allocation9], 0 }
  0x19   :  { %30 = vsyncpa [#allocation9 + $0x1], 0 }
  0x1a   :  { %31 = vsyncpa [#allocation12], 0 }
  0x1b   :  { %33 = vsyncpa [#allocation12 + $0x1], 0 }
  0x1c   :  { %34 = vsyncpa [#allocation15], 0 }
  0x1d   :  { %36 = vsyncpa [#allocation15 + $0x1], 0 }
  0x1e   :  { %37 = vsyncpa [#allocation18], 0 }
  0x1f   :  { %39 = vsyncpa [#allocation18 + $0x1], 0 }
  0x20   :  { %40 = vsyncpa [#allocation21], 0 }
  0x21   :  { %42 = vsyncpa [#allocation21 + $0x1], 0 }
  0x22   :  { %43 = vsyncpa [#allocation24], 0 }
  0x23   :  { %44 = vsyncpa [#allocation27], 0 }
  0x24   :  { %45 = vsyncpa [#allocation7], 0 }
  0x25   :  { %47 = vsyncpa [#allocation7 + $0x1], 0  ;;  %s2987_s1 = smov 0   ;;  %s2989_s22 = smov 0  }
  0x26   :  { %s2991_s23 = smov 0   ;;  %s2993_s24 = smov 0  }
  0x27   :  { %s2995_s2 = smov 0   ;;  %s2997_s25 = smov 0  }
  0x28   :  { %s2999_s3 = smov 0   ;;  %s3001_s26 = smov 0  }
  0x29   :  { %s3003_s27 = smov 0   ;;  %s3005_s28 = smov 0  }
  0x2a   :  { %s3007_s4 = smov 0  }
  0x2b LB: > { %3516 = sst [smem:[#allocation39_spill]] %s2830_s22  ;;  %s3041_s29 = sadd.s32 4294967295, %s2866_s4   ;;  %s2866_s4 = sphi %s3007_s4, %s53_s4   ;;  %s2862_s28 = sphi %s3005_s28, %s3594_s28   ;;  %s2858_s27 = sphi %s3003_s27, %s3593_s27   ;;  %s2854_s26 = sphi %s3001_s26, %s3592_s26   ;;  %s2850_s3 = sphi %s2999_s3, %s3591_s3   ;;  %s2846_s25 = sphi %s2997_s25, %s3584_s25   ;;  %s2842_s2 = sphi %s2995_s2, %s3590_s2   ;;  %s2838_s24 = sphi %s2993_s24, %s3589_s24   ;;  %s2834_s23 = sphi %s2991_s23, %s3588_s23   ;;  %s2830_s22 = sphi %s2989_s22, %s3587_s22   ;;  %s2826_s1 = sphi %s2987_s1, %s3581_s1  }
  0x2c   : > { %3517 = sst [smem:[#allocation40_spill]] %s2846_s25  ;;  %p205_p0 = scmp.ne.s32.totalorder %s2830_s22, %s2826_s1 }
  0x2d   : > { %3518 = sst [smem:[#allocation41_spill]] %s2850_s3  ;;  %p3489_p1 = scmp.eq.s32.totalorder %s3041_s29, 0 }
  0x2e   : > { %3519 = sst [smem:[#allocation42_spill]] %s2854_s26  ;;  %p1951_p2 = scmp.ge.s32.totalorder %s2866_s4, 1 }
  0x2f   : > { %p586_p3 = scmp.lt.s32.totalorder %s2866_s4, 5  ;;  %p3049_p4 = por %p205_p0, %p3489_p1 }
  0x30   : > { %s3522_s20 = sld [smem:[#allocation52_spill]]  ;;  %s2868_s1 = smov [#allocation10]  }
  0x31   : > { %s3520_s30 = scalar_select %p3049_p4, 1, 0 }
  0x32   : > { %p3056_p5 = pnand %p1951_p2, %p586_p3  ;;  %s603_s12 = sshll.u32 %s2868_s1, 4  ;;  %s604_s12 = int_to_ptr.vmem [resolvable:$true] %s603_s12 }
  0x33   : > { %3521 = sst [smem:[#allocation43_spill]] %s3520_s30  ;;  %s2869_s6 = smov [#allocation23]  }
  0x34   : > { %s3523_s18 = scalar_select %p3056_p5, 1, 0 }
  0x35   : > { %p2099_p6 = pneg %p3056_p5  ;;  %s3525_s16 = sld [smem:[#allocation65_spill]] }
  0x36   : > { %s601_s26 = sshll.u32 %s3522_s20, 4  ;;  %3524 = sst [smem:[#allocation44_spill]] %s3523_s18  ;;  %s602_s26 = int_to_ptr.hbm [resolvable:$true] %s601_s26 }
  0x37   : > { %p3067_p7 = pnand %p2099_p6, %p3489_p1  ;;  %s614_s3 = sshll.u32 %s2869_s6, 4  ;;  %s615_s3 = int_to_ptr.vmem [resolvable:$true] %s614_s3 }
  0x38   : > { %s2870_s1 = smov 64   ;;  %s2871_s10 = smov 4  }
  0x39   : > { %2102 = dma.hbm_to_vmem [thread:$0]  (!%p3067_p7), %s602_s26, 16, %s604_s12, [#allocation9]  }
  0x3a   : > { %p80_p8 = scmp.eq.s32.totalorder %s2866_s4, 0  ;;  %p199_p9 = scmp.ne.s32.totalorder %s2834_s23, %s2830_s22 }
  0x3b   : > { %s612_s20 = sshll.u32 %s3525_s16, 4  ;;  %p2151_p10 = scmp.lt.s32.totalorder %s2866_s4, 4  ;;  %s613_s20 = int_to_ptr.hbm [resolvable:$true] %s612_s20 }
  0x3c   : > { %2105 = dma.hbm_to_vmem [thread:$0]  (!%p3067_p7), %s613_s20, 256, %s615_s3, [#allocation24], %s2870_s1, %s2870_s1, %s2871_s10  }
  0x3d   : > { %s3081_s16 = sand.u32 1, %s2866_s4   ;;  %s3084_s30 = sand.u32 1, %s2834_s23  }
  0x3e   : > { %p201_p11 = por %p199_p9, %p80_p8  ;;  %s3527_s5 = sld [smem:[#allocation54_spill]] }
  0x3f   : > { %s702_s20 = scalar_lea.vmem [#allocation11], %s3084_s30  ;;  %s3529_s8 = sld [smem:[#allocation57_spill]] }
  0x40   : > { %s709_s1 = sshll.u32 %s702_s20, 4  ;;  %p3095_p12 = pnand %p2151_p10, %p201_p11  ;;  %s710_s1 = int_to_ptr.vmem [resolvable:$true] %s709_s1 }
  0x41   : > { %s744_s20 = scalar_lea.vmem [#allocation14], %s3084_s30  ;;  %s3487_s18 = scalar_lea.sflag [#allocation15], %s3081_s16 }
  0x42   : > { %s3530_s11 = sld [smem:[#allocation60_spill]]  ;;  %s786_s15 = scalar_lea.vmem [#allocation17], %s3084_s30 }
  0x43   : > { %s793_s13 = sshll.u32 %s786_s15, 4  ;;  %s3531_s14 = sld [smem:[#allocation63_spill]]  ;;  %s794_s13 = int_to_ptr.vmem [resolvable:$true] %s793_s13 }
  0x44   : > { %s705_s26 = scalar_lea.hbm %s3527_s5, %s2858_s27  ;;  %s751_s5 = sshll.u32 %s744_s20, 4  ;;  %s752_s5 = int_to_ptr.vmem [resolvable:$true] %s751_s5 }
  0x45   : > { %s707_s3 = sshll.u32 %s705_s26, 4  ;;  %s747_s6 = scalar_lea.hbm %s3529_s8, %s2858_s27  ;;  %s708_s3 = int_to_ptr.hbm [resolvable:$true] %s707_s3 }
  0x46   : > { %s749_s12 = sshll.u32 %s747_s6, 4  ;;  %s3488_s26 = scalar_lea.sflag [#allocation12], %s3081_s16  ;;  %s750_s12 = int_to_ptr.hbm [resolvable:$true] %s749_s12 }
  0x47   : > { %2121 = dma.hbm_to_vmem [thread:$0]  (!%p3095_p12), %s708_s3, 16, %s710_s1, %s3488_s26  }
  0x48   : > { %2127 = dma.hbm_to_vmem [thread:$0]  (!%p3095_p12), %s750_s12, 16, %s752_s5, %s3487_s18  }
  0x49   : > { %s789_s6 = scalar_lea.hbm %s3530_s11, %s2858_s27  ;;  %s3491_s3 = scalar_lea.sflag [#allocation18], %s3081_s16 }
  0x4a   : > { %s791_s8 = sshll.u32 %s789_s6, 4  ;;  %s831_s5 = scalar_lea.hbm %s3531_s14, %s2858_s27  ;;  %s792_s8 = int_to_ptr.hbm [resolvable:$true] %s791_s8 }
  0x4b   : > { %2133 = dma.hbm_to_vmem [thread:$0]  (!%p3095_p12), %s792_s8, 16, %s794_s13, %s3491_s3  }
  0x4c   : > { %s828_s12 = scalar_lea.vmem [#allocation20], %s3084_s30  ;;  %s833_s0 = sshll.u32 %s831_s5, 4  ;;  %s834_s0 = int_to_ptr.hbm [resolvable:$true] %s833_s0 }
  0x4d   : > { %s835_s22 = sshll.u32 %s828_s12, 4  ;;  %s3532_s17 = sld [smem:[#allocation66_spill]]  ;;  %s836_s22 = int_to_ptr.vmem [resolvable:$true] %s835_s22 }
  0x4e   : > { %s3490_s26 = scalar_lea.sflag [#allocation21], %s3081_s16  ;;  %s2872_s8 = smov [#allocation25]  }
  0x4f   : > { %2139 = dma.hbm_to_vmem [thread:$0]  (!%p3095_p12), %s834_s0, 16, %s836_s22, %s3490_s26  }
  0x50   : > { %s629_s13 = sshll.u32 %s2872_s8, 4  ;;  %s3533_s19 = sld [smem:[#allocation68_spill]]  ;;  %s630_s13 = int_to_ptr.vmem [resolvable:$true] %s629_s13 }
  0x51   : > { %s2873_s12 = smov [#allocation26]   ;;  %s1950_s0 = sadd.s32 4294967294, %s2866_s4  }
  0x52   : > { %s644_s22 = sshll.u32 %s2873_s12, 4  ;;  %s62_s6 = sadd.s32 1, %s2858_s27  ;;  %s645_s22 = int_to_ptr.vmem [resolvable:$true] %s644_s22 }
  0x53   : > { %s627_s18 = sshll.u32 %s3532_s17, 4  ;;  %s65_s15 = sadd.s32 1, %s2862_s28  ;;  %s628_s18 = int_to_ptr.hbm [resolvable:$true] %s627_s18 }
  0x54   : > { %2108 = dma.hbm_to_vmem [thread:$0]  (!%p3067_p7), %s628_s18, 16, %s630_s13, [#allocation24]  }
  0x55   : > { %p63_p13 = scmp.ge.s32.totalorder %s62_s6, 2  ;;  %s72_s8 = sadd.s32 1, %s2846_s25 }
  0x56   : > { %s642_s5 = sshll.u32 %s3533_s19, 4  ;;  %p79_p0 = scmp.ne.s32.totalorder %s2846_s25, %s2842_s2  ;;  %s643_s5 = int_to_ptr.hbm [resolvable:$true] %s642_s5 }
  0x57   : > { %2111 = dma.hbm_to_vmem [thread:$0]  (!%p3067_p7), %s643_s5, 16, %s645_s22, [#allocation27]  }
  0x58   : > { %p85_p2 = scmp.ne.s32.totalorder %s2842_s2, %s2838_s24  ;;  %s3596_s6 = smov (%p63_p13, %s62_s6), 0 }
  0x59   : > { %3534 = sst [smem:[#allocation45_spill]] %s3596_s6  ;;  %s3598_s15 = smov (!%p63_p13, %s65_s15), %s2862_s28 }
  0x5a   : > { %p3160_p3 = por %p80_p8, %p79_p0  ;;  %p3169_p6 = por %p3489_p1, %p85_p2 }
  0x5b   : > { %p67_p7 = scmp.ge.s32.totalorder %s3598_s15, 2  ;;  %s189_s13 = ssub.s32 %s2858_s27, %s3596_s6 }
  0x5c   : > { %p190_p9 = scmp.eq.s32.totalorder %s189_s13, 0  ;;  %p573_p11 = scmp.eq.s32.totalorder %s3041_s29, 3 }
  0x5d   : > { %s3600_s15 = smov (%p67_p7, %s3598_s15), 0  ;;  %s3538_s1 = sadd.s32 1, %s2834_s23 }
  0x5e   : > { %3537 = sst [smem:[#allocation46_spill]] %s3600_s15  ;;  %s69_s5 = ssub.s32 %s2862_s28, %s3600_s15 }
  0x5f   : > { %s3181_s20 = scalar_select %p190_p9, %s2834_s23, %s3538_s1  }
  0x60   : > { %p3188_p8 = por %p573_p11, %p79_p0  ;;  %p70_p13 = scmp.eq.s32.totalorder %s69_s5, 0 }
  0x61   : > { %3539 = sst [smem:[#allocation47_spill]] %s3181_s20  ;;  %p579_p1 = scmp.eq.s32.totalorder %s1950_s0, 3 }
  0x62   : > { %s655_s22 = sand.u32 1, %s2846_s25   ;;  %s1958_s13 = sshll.u32 %s2862_s28, 3 }
  0x63   : > { %s3195_s26 = scalar_select %p70_p13, %s2846_s25, %s72_s8  }
  0x64   : > { %p3200_p7 = por %p579_p1, %p85_p2  ;;  %s1957_s1 = sshll.u32 %s655_s22, 3 }
  0x65   : > { %3541 = sst [smem:[#allocation48_spill]] %s3195_s26  ;;  %s659_s5 = scalar_lea.vmem [#allocation5], %s1957_s1 }
  0x66   : > { %s3543_s17 = sld [smem:[#allocation49_spill]]  ;;  %s667_s0 = sshll.u32 %s659_s5, 4  ;;  %s668_s0 = int_to_ptr.vmem [resolvable:$true] %s667_s0 }
  0x67   : > { %p2113_p0 = pnand %p2151_p10, %p3160_p3  ;;  %s3544_s26 = sld [smem:[#allocation50_spill]] }
  0x68   : > { %s656_s20 = scalar_lea.sflag [#allocation6], %s655_s22  ;;  %s677_s14 = scalar_lea.vmem [#allocation8], %s655_s22 }
  0x69   : > { %s3545_s7 = sld [smem:[#allocation56_spill]]  ;;  %s727_s1 = scalar_lea.vmem [#allocation13], %s3084_s30 }
  0x6a   : > { %s734_s5 = sshll.u32 %s727_s1, 4  ;;  %s3547_s9 = sld [smem:[#allocation58_spill]]  ;;  %s735_s5 = int_to_ptr.vmem [resolvable:$true] %s734_s5 }
  0x6b   : > { %s761_s8 = scalar_lea.vmem [#allocation16], %s3084_s30  ;;  %s3549_s18 = sld [smem:[#allocation62_spill]] }
  0x6c   : > { %s663_s19 = scalar_lea.hbm %s3543_s17, %s1958_s13  ;;  %s684_s17 = sshll.u32 %s677_s14, 4  ;;  %s685_s17 = int_to_ptr.vmem [resolvable:$true] %s684_s17 }
  0x6d   : > { %s665_s15 = sshll.u32 %s663_s19, 4  ;;  %s680_s25 = scalar_lea.hbm %s3544_s26, %s2862_s28  ;;  %s666_s15 = int_to_ptr.hbm [resolvable:$true] %s665_s15 }
  0x6e   : > { %2115 = dma.hbm_to_vmem [thread:$0]  (!%p2113_p0), %s666_s15, 128, %s668_s0, %s656_s20  }
  0x6f   : > { %s682_s11 = sshll.u32 %s680_s25, 4  ;;  %s675_s19 = scalar_lea.sflag [#allocation9], %s3081_s16  ;;  %s683_s11 = int_to_ptr.hbm [resolvable:$true] %s682_s11 }
  0x70   : > { %2118 = dma.hbm_to_vmem [thread:$0]  (!%p2113_p0), %s683_s11, 16, %s685_s17, %s675_s19  }
  0x71   : > { %s730_s26 = scalar_lea.hbm %s3545_s7, %s2858_s27  ;;  %s3546_s25 = scalar_lea.sflag [#allocation12], %s3081_s16 }
  0x72   : > { %s732_s6 = sshll.u32 %s730_s26, 4  ;;  %s764_s22 = scalar_lea.hbm %s3547_s9, %s2858_s27  ;;  %s733_s6 = int_to_ptr.hbm [resolvable:$true] %s732_s6 }
  0x73   : > { %2124 = dma.hbm_to_vmem [thread:$0]  (!%p3095_p12), %s733_s6, 16, %s735_s5, %s3546_s25  }
  0x74   : > { %s766_s0 = sshll.u32 %s764_s22, 4  ;;  %s768_s11 = sshll.u32 %s761_s8, 4  ;;  %s767_s0 = int_to_ptr.hbm [resolvable:$true] %s766_s0  ;;  %s769_s11 = int_to_ptr.vmem [resolvable:$true] %s768_s11 }
  0x75   : > { %s3548_s14 = scalar_lea.sflag [#allocation15], %s3081_s16  ;;  %s814_s13 = scalar_lea.hbm %s3549_s18, %s2858_s27 }
  0x76   : > { %2130 = dma.hbm_to_vmem [thread:$0]  (!%p3095_p12), %s767_s0, 16, %s769_s11, %s3548_s14  }
  0x77   : > { %s816_s26 = sshll.u32 %s814_s13, 4  ;;  %s811_s6 = scalar_lea.vmem [#allocation19], %s3084_s30  ;;  %s817_s26 = int_to_ptr.hbm [resolvable:$true] %s816_s26 }
  0x78   : > { %s818_s1 = sshll.u32 %s811_s6, 4  ;;  %s3550_s5 = scalar_lea.sflag [#allocation18], %s3081_s16  ;;  %s819_s1 = int_to_ptr.vmem [resolvable:$true] %s818_s1 }
  0x79   : > { %2136 = dma.hbm_to_vmem [thread:$0]  (!%p3095_p12), %s817_s26, 16, %s819_s1, %s3550_s5  }
  0x7a   : > { %s3551_s20 = sld [smem:[#allocation64_spill]]  ;;  %s845_s7 = scalar_lea.vmem [#allocation22], %s3084_s30 }
  0x7b   : > { %s852_s9 = sshll.u32 %s845_s7, 4  ;;  %s3552_s0 = scalar_lea.sflag [#allocation21], %s3081_s16  ;;  %s853_s9 = int_to_ptr.vmem [resolvable:$true] %s852_s9 }
  0x7c   : > { %s3255_s14 = sand.u32 (!%p3056_p5), 1, %s2842_s2  }
  0x7d   : > { %s1960_s17 = sshll.u32 (!%p3056_p5), %s3255_s14, 3  ;;  %s864_s19 = scalar_lea.sflag (!%p3056_p5), [#allocation6], %s3255_s14 }
  0x7e   : > { %861 = sbr.rel (%p3056_p5) target bundleno = 2602 (0xa2a), region = 100  ;;  %s3259_s18 = scalar_lea.vmem (!%p3056_p5), [#allocation5], %s1960_s17 }
  0x80   : > { %s848_s22 = scalar_lea.hbm %s3551_s20, %s2858_s27 }
  0x81   : > { %s850_s8 = sshll.u32 %s848_s22, 4  ;;  %s851_s8 = int_to_ptr.hbm [resolvable:$true] %s850_s8 }
  0x82   : > { %2142 = dma.hbm_to_vmem [thread:$0]  (!%p3095_p12), %s851_s8, 16, %s853_s9, %s3552_s0  }
  0x83   : > { %2785 = dma.done.wait (%p3169_p6), %s864_s19, 128  }
  0x84   : > { %2787 = vsyncadd (%p3169_p6), %s864_s19, 4294967168  ;;  %s873_s7 = sand.u32 1, %s3041_s29  }
  0x85   : > { %s874_s9 = scalar_lea.sflag [#allocation9], %s873_s7 }
  0x86   : > { %2789 = dma.done.wait (%p3169_p6), %s874_s9, 16  }
  0x87   : > { %2791 = vsyncadd (%p3169_p6), %s874_s9, 4294967280  ;;  %p3554_p1 = scmp.eq.s32.totalorder %s3041_s29, 0 }
  0x89   : > { %2793 = dma.done.wait (%p3554_p1), [#allocation9], 16   ;;  %p3555_p5 = pmov %p3554_p1 }
  0x8a   : > { %s3556_s30 = sld [smem:[#allocation39_spill]]  ;;  %s888_s26 = scalar_lea.sflag [#allocation12], %s873_s7 }
  0x8b   : > { %2795 = vsyncadd (%p3555_p5), [#allocation9], 4294967280 }
  0x90   : > { %s3276_s13 = sand.u32 1, %s3556_s30  }
  0x91   : > { %2797 = dma.done.wait (%p3049_p4), %s888_s26, 32  }
  0x92   : > { %2799 = vsyncadd (%p3049_p4), %s888_s26, 4294967264  ;;  %s906_s1 = scalar_lea.sflag [#allocation15], %s873_s7 }
  0x93   : > { %2801 = dma.done.wait (%p3049_p4), %s906_s1, 32  }
  0x94   : > { %2803 = vsyncadd (%p3049_p4), %s906_s1, 4294967264  ;;  %s924_s15 = scalar_lea.sflag [#allocation18], %s873_s7 }
  0x95   : > { %2805 = dma.done.wait (%p3049_p4), %s924_s15, 32  }
  0x96   : > { %2807 = vsyncadd (%p3049_p4), %s924_s15, 4294967264  ;;  %s942_s8 = scalar_lea.sflag [#allocation21], %s873_s7 }
  0x97   : > { %2809 = dma.done.wait (%p3049_p4), %s942_s8, 32  }
  0x98   : > { %2811 = vsyncadd (%p3049_p4), %s942_s8, 4294967264  ;;  %p3558_p10 = pmov %p3554_p1 }
  0x99   : > { %p3559_p12 = pmov %p3554_p1 }
  0x9a   : > { %2813 = dma.done.wait (%p3558_p10), [#allocation24], 272  }
  0x9b   : > { %2815 = vsyncadd (%p3559_p12), [#allocation24], 4294967024  ;;  %p3560_p2 = pmov %p3554_p1 }
  0x9c   : > { %p3561_p3 = pmov %p3554_p1 }
  0x9d   : > { %2817 = dma.done.wait (%p3560_p2), [#allocation27], 16  }
  0x9e   : > { %2819 = vsyncadd (%p3561_p3), [#allocation27], 4294967280  ;;  %s3562_s17 = sld [smem:[#allocation41_spill]] }
  0x9f   : > { %s3563_s26 = sld [smem:[#allocation53_spill]] }
  0xa0   : > { %s3564_s11 = sld [smem:[#allocation55_spill]] }
  0xa1   : > { %s3565_s20 = sld [smem:[#allocation59_spill]] }
  0xa2   : > { %s3566_s16 = sld [smem:[#allocation61_spill]] }
  0xa4   : > { %p1081_p6 = scmp.lt.s32.totalorder %s3562_s17, 1  ;;  %p1973_p4 = scmp.ne.s32.totalorder %s3562_s17, 0 }
  0xa5   : > { %s3567_s21 = sld [smem:[#allocation51_spill]] (!%p1973_p4) }
  0xa6   : > { %s1082_s19 = scalar_select %p1081_p6, %s3562_s17, 1 }
  0xa7   : > { %1105 = sbr.rel (%p1973_p4) target bundleno = 444 (0x1bc), region = 160 }
  0xa8   : > { %s2043_s7 = sshll.u32 %s1082_s19, 4  ;;  %s2046_s9 = sshll.u32 %s1082_s19, 5 }
  0xa9   : > { %s3315_s1 = scalar_lea.vmem %s3563_s26, %s2043_s7  ;;  %s3320_s0 = scalar_lea.vmem %s3564_s11, %s2043_s7 }
  0xaa   : > { %s3325_s25 = scalar_lea.vmem %s3565_s20, %s2043_s7  ;;  %s3330_s6 = scalar_lea.vmem %s3566_s16, %s2046_s9 }
  0xab   : > { %s1080_s19 = scalar_lea.vmem [#allocation28], %s3255_s14 }
  0xac   : > { %v1106_v0 = vld [vmem:[%s3259_s18] sm:$0xff]  ;;  %vm1109_vm0 = vcmask 261120   ;;  %v2874_v2 = vmov 32.0   ;;  %v2260_v25 = vld [vmem:[#allocation10] ss:$0 sm:$0xff]  ;;  %vm1149_vm5 = vcmask 257024  }
  0xad   : > { %v1110_v1 = vsel %vm1109_vm0, %v1106_v0, 0.0  ;;  %2261 = vrcp.f32 %v2874_v2  ;;  %v2259_v23 = vld [vmem:[%s3567_s21] ss:$0 sm:$0xff] }
  0xae   : > { %1111 = vadd.xlane.f32.xlu0 %v1110_v1 }
  0xb3   : > { %v2262_v3 = vpop.eup %2261 }
  0xb4   : > { %v1114_v4 = vmul.f32 32.0, %v2262_v3  ;;  %vm1118_vm1 = vweird.f32 %v2262_v3 }
  0xb6   : > { %v1115_v5 = vsub.f32 1.0, %v1114_v4 }
  0xb8   : > { %v1116_v6 = vmul.f32 %v2262_v3, %v1115_v5 }
  0xba   : > { %v1117_v7 = vadd.f32 %v2262_v3, %v1116_v6 }
  0xbc   : > { %v1119_v8 = vsel %vm1118_vm1, %v2262_v3, %v1117_v7 }
 0x121   : > { %v1112_v9 = vpop.xlane.xlu0 %1111 }
 0x122   : > { %v1120_v10 = vmul.f32 %v1119_v8, %v1112_v9 }
 0x124   : > { %v1121_v11 = vsub.f32 %v1106_v0, %v1120_v10 }
 0x126   : > { %v1122_v12 = vmul.f32 %v1121_v11, %v1121_v11 }
 0x128   : > { %v1123_v13 = vsel %vm1109_vm0, %v1122_v12, 0.0 }
 0x129   : > { %1124 = vadd.xlane.f32.xlu0 %v1123_v13 }
 0x19c   : > { %v1125_v14 = vpop.xlane.xlu0 %1124 }
 0x19d   : > { %v1126_v15 = vmul.f32 %v1125_v14, %v1119_v8 }
 0x19f   : > { %v1127_v16 = vadd.f32 1e-05, %v1126_v15 }
 0x1a1   : > { %2263 = vrsqrt.f32 %v1127_v16  ;;  %vm1134_vm3 = vweird.f32 %v1127_v16 }
 0x1a7   : > { %v2264_v17 = vpop.eup %2263 }
 0x1a8   : > { %v1129_v18 = vmul.f32 %v2264_v17, %v1127_v16  ;;  %vm1135_vm2 = vweird.f32 %v2264_v17 }
 0x1a9   : > { %vm1136_vm4 = vmor %vm1134_vm3, %vm1135_vm2 }
 0x1aa   : > { %v1130_v19 = vmul.f32 %v2264_v17, %v1129_v18 }
 0x1ac   : > { %v1131_v20 = vmul.f32 0.5, %v1130_v19 }
 0x1ae   : > { %v1132_v21 = vsub.f32 1.5, %v1131_v20 }
 0x1b0   : > { %v1133_v22 = vmul.f32 %v2264_v17, %v1132_v21 }
 0x1b2   : > { %v1137_v24 = vsel %vm1136_vm4, %v2264_v17, %v1133_v22 }
 0x1b3   : > { %v1138_v26 = vmul.f32 %v1137_v24, %v1121_v11 }
 0x1b5   : > { %v1142_v27 = vmul.f32 %v2259_v23, %v1138_v26 }
 0x1b7   : > { %v1146_v28 = vadd.f32 %v2260_v25, %v1142_v27 }
 0x1b9   : > { %1147 = vst.msk [vmem:[#allocation2] sm:$0xff] %vm1109_vm0, %v1146_v28  ;;  %v1148_v29 = vpack.c.bf16 %v1146_v28, %v1146_v28 }
 0x1bb   : > { %1150 = vst.msk [vmem:[#allocation3] sm:$0xf] %vm1149_vm5, %v1148_v29 }
 0x1bc PF: > { %v2048_v30 = vld [vmem:[%s3315_s1 + $0x8] sm:$0xff]  ;;  %v2047_v31 = vld [vmem:[%s3315_s1] sm:$0xff]  ;;  %vm1172_vm6 = vcmask 261120   ;;  %s3568_s5 = scalar_lea.vmem [#allocation11], %s3276_s13  ;;  %s2875_s20 = smov 96   ;;  %vm1201_vm7 = vcmask 130048  }
 0x1bd   : > { %1182 = vmatpush.bf16.msra.mxu0 %v2048_v30  ;;  %v2265_v33 = vld [vmem:[%s3568_s5] ss:$0 sm:$0xff]  ;;  %s2876_s22 = smov 112   ;;  %s2877_s11 = smov 80   ;;  %vm1239_vm8 = vcmask 1043456   ;;  %vm1221_vm9 = vcmask 64512  }
 0x1be   : > { %s2878_s17 = smov 64   ;;  %s2879_s7 = smov 48   ;;  %v2050_v16 = vld [vmem:[%s3320_s0 + $0x8] sm:$0xff]  ;;  %v2049_v21 = vld [vmem:[%s3320_s0] sm:$0xff]  ;;  %vm1320_vm10 = vcmask 261248   ;;  %vm1484_vm15 = vcmask 523264  }
 0x1bf   : > { %s3569_s9 = scalar_lea.vmem [#allocation8], %s3255_s14  ;;  %s2880_s30 = smov 16   ;;  %vm1536_vm3 = vcmask 257024  }
 0x1c0   : > { %v2266_v53 = vld [vmem:[%s3569_s9] ss:$0 sm:$0xff]  ;;  %s3570_s10 = scalar_lea.vmem [#allocation13], %s3276_s13  ;;  %s3572_s0 = scalar_lea.vmem [#allocation16], %s3276_s13 }
 0x1c1   : > { %1183 = vmatpush.bf16.msra.mxu0 %v2047_v31  ;;  %v2267_v25 = vld [vmem:[%s3570_s10] ss:$0 sm:$0xff]  ;;  %s3573_s26 = scalar_lea.vmem [#allocation17], %s3276_s13  ;;  %s3575_s1 = scalar_lea.vmem [#allocation20], %s3276_s13 }
 0x1c2   : > { %v1151_v32 = vld [vmem:[#allocation3] sm:$0xf]  ;;  %v1360_v27 = vld [vmem:[#allocation2] sm:$0xff]  ;;  %s3576_s15 = scalar_lea.vmem [#allocation22], %s3276_s13  ;;  %s3577_s8 = sld [smem:[#allocation41_spill]] }
 0x1c4   : > { %1982 = vmatmul.msk.bf16.vlgmr.msra.gmra.mxu0 %vm1172_vm6, %v1151_v32  ;;  %v2881_v32 = vmov 32.0  }
 0x1c5   : > { %1353 = vmatpush.bf16.msrb.mxu0 %v2050_v16 }
 0x1c8   : > { %p2022_p9 = scmp.ne.s32.totalorder %s3577_s8, 1 }
 0x1c9   : > { %1354 = vmatpush.bf16.msrb.mxu0 %v2049_v21  ;;  %s3578_s18 = sld [smem:[#allocation67_spill]] (!%p2022_p9) }
 0x241   : > { %v1185_v34 = vpop.f32.mrf.mxu0 }
 0x242   : > { %v1186_v35 = vadd.f32 %v2265_v33, %v1185_v34 }
 0x244   : > { %v1189_v36 = vmul.f32 0.25, %v1186_v35  ;;  %v1191_v37 = vpack.c.bf16 %v1186_v35, %v1186_v35 }
 0x246   : > { %v1190_v38 = vpack.c.bf16 %v1189_v36, %v1189_v36  ;;  %v1197_v39 = vunpack.c.l.b16 %v1191_v37 }
 0x248   : > { %v1198_v40 = vpack.c.b16 %v1197_v39, %v1197_v39  ;;  %v1258_v41 = vunpack.c.l.b16 %v1190_v38 }
 0x249   : > { %v1187_v42 = vpop.f32.mrf.mxu0 }
 0x24a   : > { %1199 = vrot.lane.b32.xlu0 %v1198_v40, %s2875_s20  ;;  %v1259_v43 = vpack.c.b16 %v1258_v41, %v1258_v41 }
 0x24c   : > { %1260 = vrot.lane.b32.xlu1 %v1259_v43, %s2876_s22 }
 0x252   : > { %1262 = vrot.lane.b32.xlu0 %v1198_v40, %s2877_s11 }
 0x25a   : > { %1234 = vrot.lane.b32.xlu0 %v1198_v40, %s2878_s17 }
 0x262   : > { %1295 = vrot.lane.b32.xlu0 %v1198_v40, %s2879_s7 }
 0x2bc   : > { %v1200_v44 = vpop.permute.xlu0 %1199 }
 0x2bd   : > { %v1206_v45 = vsel %vm1201_vm7, %v1200_v44, 0  ;;  %v2052_v44 = vld [vmem:[%s3325_s25 + $0x8] sm:$0xff] }
 0x2be   : > { %1215 = vmatpush.bf16.xpose.msra.mxu1 %v1206_v45  ;;  %v1261_v48 = vpop.permute.xlu1 %1260  ;;  %v2051_v45 = vld [vmem:[%s3325_s25] sm:$0xff]  ;;  %s3571_s25 = scalar_lea.vmem [#allocation14], %s3276_s13 }
 0x2c4   : > { %v1263_v46 = vpop.permute.xlu0 %1262 }
 0x2c5   : > { %1983 = vmatmul.msk.bf16.vlgmr.msra.gmra.mxu1 %vm1201_vm7, %v1190_v38  ;;  %v1268_v47 = vsel %vm1201_vm7, %v1263_v46, 0 }
 0x2c6   : > { %1277 = vmatpush.bf16.xpose.msra.mxu3 %v1268_v47  ;;  %1431 = vmatpush.bf16.msrb.mxu1 %v2052_v44 }
 0x2ca   : > { %1432 = vmatpush.bf16.msrb.mxu1 %v2051_v45 }
 0x2cc   : > { %v1235_v49 = vpop.permute.xlu0 %1234 }
 0x2cd   : > { %1985 = vmatmul.msk.bf16.vlgmr.msra.gmra.mxu3 %vm1201_vm7, %v1261_v48  ;;  %v1241_v50 = vsel %vm1239_vm8, %v1235_v49, 0 }
 0x2ce   : > { %1250 = vmatpush.bf16.msra.mxu2 %v1241_v50 }
 0x2d4   : > { %v1296_v51 = vpop.permute.xlu0 %1295 }
 0x2d5   : > { %v1301_v52 = vsel %vm1239_vm8, %v1296_v51, 0 }
 0x2d6   : > { %1310 = vmatpush.bf16.msrb.mxu2 %v1301_v52 }
 0x342   : > { %v1217_v54 = vpop.f32.mrf.mxu1 }
 0x343   : > { %v1218_v55 = vadd.f32 %v2266_v53, %v1217_v54 }
 0x345   : > { %v1222_v56 = vsel %vm1221_vm9, %v1218_v55, -inf }
 0x346   : > { %1223 = vmax.xlane.f32.xlu1 %v1222_v56 }
 0x34a   : > { %v1219_v57 = vpop.f32.mrf.mxu1 }
 0x350   : > { %v1279_v58 = vpop.f32.mrf.mxu3 }
 0x351   : > { %v1280_v59 = vadd.f32 %v2266_v53, %v1279_v58  ;;  %v2269_v58 = vld [vmem:[%s3572_s0] ss:$0 sm:$0xff] }
 0x353   : > { %v1283_v60 = vsel %vm1221_vm9, %v1280_v59, -inf }
 0x354   : > { %1284 = vmax.xlane.f32.xlu2 %v1283_v60 }
 0x358   : > { %v1281_v61 = vpop.f32.mrf.mxu3 }
 0x3b9   : > { %v1224_v62 = vpop.xlane.xlu1 %1223 }
 0x3ba   : > { %v1225_v63 = vsub.f32 %v1218_v55, %v1224_v62  ;;  %v2268_v55 = vld [vmem:[%s3571_s25] ss:$0 sm:$0xff]  ;;  %v2056_v62 = vld [vmem:[%s3330_s6 + $0x18] sm:$0xff] }
 0x3bb   : > { %1492 = vmatpush.bf16.msrb.mxu3 %v2056_v62 }
 0x3bc   : > { %v1226_v0 = vmul.f32 1.442695, %v1225_v63  ;;  %v2055_v63 = vld [vmem:[%s3330_s6 + $0x10] sm:$0xff] }
 0x3be   : > { %2274 = vpow2.f32 %v1226_v0  ;;  %v2054_v0 = vld [vmem:[%s3330_s6 + $0x8] sm:$0xff] }
 0x3bf   : > { %1493 = vmatpush.bf16.msrb.mxu3 %v2055_v63 }
 0x3c3   : > { %1494 = vmatpush.bf16.msrb.mxu3 %v2054_v0 }
 0x3c4   : > { %v2275_v1 = vpop.eup %2274 }
 0x3c5   : > { %v1228_v2 = vsel %vm1221_vm9, %v2275_v1, 0.0 }
 0x3c6   : > { %1229 = vadd.xlane.f32.xlu2 %v1228_v2  ;;  %v2270_v2 = vld [vmem:[%s3573_s26] ss:$0 sm:$0xff] }
 0x3c7   : > { %v1285_v3 = vpop.xlane.xlu2 %1284 }
 0x3c8   : > { %v1286_v4 = vsub.f32 %v1280_v59, %v1285_v3 }
 0x3ca   : > { %v1287_v5 = vmul.f32 1.442695, %v1286_v4 }
 0x3cc   : > { %2276 = vpow2.f32 %v1287_v5 }
 0x3d2   : > { %v2277_v6 = vpop.eup %2276 }
 0x3d3   : > { %v1289_v7 = vsel %vm1221_vm9, %v2277_v6, 0.0 }
 0x3d4   : > { %1290 = vadd.xlane.f32.xlu2 %v1289_v7 }
 0x439   : > { %v1230_v8 = vpop.xlane.xlu2 %1229 }
 0x43a   : > { %2278 = vrcp.f32 %v1230_v8 }
 0x440   : > { %v2279_v9 = vpop.eup %2278 }
 0x441   : > { %v1232_v10 = vmul.f32 %v2279_v9, %v2275_v1  ;;  %v2053_v1 = vld [vmem:[%s3330_s6] sm:$0xff]  ;;  %s3574_s6 = scalar_lea.vmem [#allocation19], %s3276_s13 }
 0x442   : > { %1495 = vmatpush.bf16.msrb.mxu3 %v2053_v1  ;;  %v2271_v16 = vld [vmem:[%s3574_s6] ss:$0 sm:$0xff] }
 0x443   : > { %v1233_v11 = vpack.c.bf16 %v1232_v10, %v1232_v10 }
 0x445   : > { %1984 = vmatmul.msk.bf16.vlgmr.msra.gmra.mxu2 %vm1221_vm9, %v1233_v11 }
 0x447   : > { %v1291_v12 = vpop.xlane.xlu2 %1290 }
 0x448   : > { %2280 = vrcp.f32 %v1291_v12 }
 0x449   : > { %2282 = vrcp.f32 %v2881_v32 }
 0x44e   : > { %v2281_v13 = vpop.eup %2280 }
 0x44f   : > { %v1293_v14 = vmul.f32 %v2281_v13, %v2277_v6  ;;  %v2283_v33 = vpop.eup %2282 }
 0x450   : > { %v1368_v34 = vmul.f32 32.0, %v2283_v33  ;;  %vm1372_vm11 = vweird.f32 %v2283_v33 }
 0x451   : > { %v1294_v15 = vpack.c.bf16 %v1293_v14, %v1293_v14 }
 0x452   : > { %v1369_v35 = vsub.f32 1.0, %v1368_v34 }
 0x454   : > { %v1370_v36 = vmul.f32 %v2283_v33, %v1369_v35 }
 0x455   : > { %1986 = vmatmul.msk.bf16.vlgmr.msrb.gmra.mxu2 %vm1221_vm9, %v1294_v15 }
 0x456   : > { %v1371_v37 = vadd.f32 %v2283_v33, %v1370_v36  ;;  %v2272_v36 = vld [vmem:[%s3575_s1] ss:$0 sm:$0xff] }
 0x458   : > { %v3365_v38 = vsel %vm1372_vm11, %v2283_v33, %v1371_v37 }
 0x4c8   : > { %v1252_v17 = vpop.f32.mrf.mxu2 }
 0x4c9   : > { %1256 = vst.msk [vmem:[#allocation4] sm:$0xff] %vm1201_vm7, %v1252_v17 }
 0x4d0   : > { %v1254_v18 = vpop.f32.mrf.mxu2 }
 0x4d8   : > { %v1312_v19 = vpop.f32.mrf.mxu2 }
 0x4d9   : > { %1317 = vrot.lane.b32.xlu2 %v1312_v19, %s2880_s30 }
 0x4e0   : > { %v1314_v20 = vpop.f32.mrf.mxu2 }
 0x533   : > { %v1318_v22 = vpop.permute.xlu2 %1317 }
 0x534   : > { %1321 = vst.msk [vmem:[#allocation4] sm:$0xff] %vm1320_vm10, %v1318_v22 }
 0x53b   : > { %v1322_v23 = vld [vmem:[#allocation4] sm:$0xff] }
 0x53c   : > { %v1323_v24 = vpack.c.bf16 %v1322_v23, %v1322_v23 }
 0x53e   : > { %1995 = vmatmul.msk.bf16.vlgmr.msrb.gmra.mxu0 %vm1172_vm6, %v1323_v24 }
 0x5bb   : > { %v1356_v26 = vpop.f32.mrf.mxu0 }
 0x5bc   : > { %v1357_v28 = vadd.f32 %v2267_v25, %v1356_v26 }
 0x5be   : > { %v1361_v29 = vadd.f32 %v1360_v27, %v1357_v28 }
 0x5c0   : > { %v1364_v30 = vsel %vm1172_vm6, %v1361_v29, 0.0 }
 0x5c1   : > { %1365 = vadd.xlane.f32.xlu0 %v1364_v30 }
 0x5c3   : > { %v1358_v31 = vpop.f32.mrf.mxu0 }
 0x634   : > { %v1366_v39 = vpop.xlane.xlu0 %1365 }
 0x635   : > { %v1374_v40 = vmul.f32 %v3365_v38, %v1366_v39  ;;  %v2273_v39 = vld [vmem:[%s3576_s15] ss:$0 sm:$0xff] }
 0x637   : > { %v1375_v41 = vsub.f32 %v1361_v29, %v1374_v40 }
 0x639   : > { %v1376_v42 = vmul.f32 %v1375_v41, %v1375_v41 }
 0x63b   : > { %v1377_v43 = vsel %vm1172_vm6, %v1376_v42, 0.0 }
 0x63c   : > { %1378 = vadd.xlane.f32.xlu2 %v1377_v43 }
 0x6af   : > { %v1379_v46 = vpop.xlane.xlu2 %1378 }
 0x6b0   : > { %v1380_v47 = vmul.f32 %v1379_v46, %v3365_v38 }
 0x6b2   : > { %v1381_v48 = vadd.f32 1e-05, %v1380_v47 }
 0x6b4   : > { %2284 = vrsqrt.f32 %v1381_v48  ;;  %vm1388_vm13 = vweird.f32 %v1381_v48 }
 0x6ba   : > { %v2285_v49 = vpop.eup %2284 }
 0x6bb   : > { %v1383_v50 = vmul.f32 %v2285_v49, %v1381_v48  ;;  %vm1389_vm12 = vweird.f32 %v2285_v49 }
 0x6bc   : > { %vm1390_vm14 = vmor %vm1388_vm13, %vm1389_vm12 }
 0x6bd   : > { %v1384_v51 = vmul.f32 %v2285_v49, %v1383_v50 }
 0x6bf   : > { %v1385_v52 = vmul.f32 0.5, %v1384_v51 }
 0x6c1   : > { %v1386_v53 = vsub.f32 1.5, %v1385_v52 }
 0x6c3   : > { %v1387_v54 = vmul.f32 %v2285_v49, %v1386_v53 }
 0x6c5   : > { %v1391_v56 = vsel %vm1390_vm14, %v2285_v49, %v1387_v54 }
 0x6c6   : > { %v1392_v57 = vmul.f32 %v1391_v56, %v1375_v41 }
 0x6c8   : > { %v1396_v59 = vmul.f32 %v2268_v55, %v1392_v57 }
 0x6ca   : > { %v1400_v60 = vadd.f32 %v2269_v58, %v1396_v59 }
 0x6cc   : > { %v1401_v61 = vpack.c.bf16 %v1400_v60, %v1400_v60 }
 0x6ce   : > { %2004 = vmatmul.msk.bf16.vlgmr.msrb.gmra.mxu1 %vm1172_vm6, %v1401_v61 }
 0x74b   : > { %v1434_v3 = vpop.f32.mrf.mxu1 }
 0x74c   : > { %v1435_v4 = vadd.f32 %v2270_v2, %v1434_v3 }
 0x74e   : > { %v1438_v5 = vmul.f32 %v1435_v4, %v1435_v4 }
 0x750   : > { %v1439_v6 = vmul.f32 %v1438_v5, %v1435_v4 }
 0x752   : > { %v1440_v7 = vmul.f32 0.044715, %v1439_v6 }
 0x753   : > { %v1436_v8 = vpop.f32.mrf.mxu1 }
 0x754   : > { %v1441_v9 = vadd.f32 %v1440_v7, %v1435_v4 }
 0x756   : > { %v1442_v10 = vmul.f32 0.7978846, %v1441_v9 }
 0x758   : > { %2286 = vtanh.f32 %v1442_v10 }
 0x75e   : > { %v2287_v11 = vpop.eup %2286 }
 0x75f   : > { %v1444_v12 = vadd.f32 1.0, %v2287_v11 }
 0x761   : > { %v1445_v13 = vmul.f32 0.5, %v1444_v12 }
 0x763   : > { %v1446_v14 = vmul.f32 %v1445_v13, %v1435_v4 }
 0x765   : > { %v1447_v15 = vpack.c.bf16 %v1446_v14, %v1446_v14 }
 0x767   : > { %2021 = vmatmul.msk.bf16.vlgmr.msrb.gmra.mxu3 %vm1484_vm15, %v1447_v15 }
 0x7ea   : > { %v1497_v17 = vpop.f32.mrf.mxu3 }
 0x7eb   : > { %v1498_v18 = vadd.f32 %v2271_v16, %v1497_v17 }
 0x7ed   : > { %v1501_v19 = vadd.f32 %v1498_v18, %v1400_v60 }
 0x7ef   : > { %v1504_v20 = vsel %vm1172_vm6, %v1501_v19, 0.0 }
 0x7f0   : > { %1505 = vadd.xlane.f32.xlu1 %v1504_v20 }
 0x7f2   : > { %v1499_v21 = vpop.f32.mrf.mxu3 }
 0x863   : > { %v1506_v22 = vpop.xlane.xlu1 %1505 }
 0x864   : > { %v1507_v23 = vmul.f32 %v1506_v22, %v3365_v38 }
 0x866   : > { %v1508_v24 = vsub.f32 %v1501_v19, %v1507_v23 }
 0x868   : > { %v1509_v25 = vmul.f32 %v1508_v24, %v1508_v24 }
 0x86a   : > { %v1510_v26 = vsel %vm1172_vm6, %v1509_v25, 0.0 }
 0x86b   : > { %1511 = vadd.xlane.f32.xlu1 %v1510_v26 }
 0x8de   : > { %v1512_v27 = vpop.xlane.xlu1 %1511 }
 0x8df   : > { %v1513_v28 = vmul.f32 %v1512_v27, %v3365_v38 }
 0x8e1   : > { %v1514_v29 = vadd.f32 1e-05, %v1513_v28 }
 0x8e3   : > { %2288 = vrsqrt.f32 %v1514_v29  ;;  %vm1521_vm1 = vweird.f32 %v1514_v29 }
 0x8e9   : > { %v2289_v30 = vpop.eup %2288 }
 0x8ea   : > { %v1516_v31 = vmul.f32 %v2289_v30, %v1514_v29  ;;  %vm1522_vm0 = vweird.f32 %v2289_v30 }
 0x8eb   : > { %vm1523_vm2 = vmor %vm1521_vm1, %vm1522_vm0 }
 0x8ec   : > { %v1517_v32 = vmul.f32 %v2289_v30, %v1516_v31 }
 0x8ee   : > { %v1518_v33 = vmul.f32 0.5, %v1517_v32 }
 0x8f0   : > { %v1519_v34 = vsub.f32 1.5, %v1518_v33 }
 0x8f2   : > { %v1520_v35 = vmul.f32 %v2289_v30, %v1519_v34 }
 0x8f4   : > { %v1524_v37 = vsel %vm1523_vm2, %v2289_v30, %v1520_v35 }
 0x8f5   : > { %v1525_v40 = vmul.f32 %v1524_v37, %v1508_v24 }
 0x8f7   : > { %v1529_v41 = vmul.f32 %v2272_v36, %v1525_v40 }
 0x8f9   : > { %v1533_v42 = vadd.f32 %v2273_v39, %v1529_v41  ;;  %1541 = sbr.rel (%p2022_p9) target bundleno = 2581 (0xa15), region = 164 }
 0x8fb   : > { %1534 = vst.msk [vmem:[#allocation2] sm:$0xff] %vm1172_vm6, %v1533_v42  ;;  %v1535_v38 = vpack.c.bf16 %v1533_v42, %v1533_v42 }
 0x8fd   : > { %1537 = vst.msk [vmem:[#allocation3] sm:$0xf] %vm1536_vm3, %v1535_v38 }
 0x8fe   : > { %v2058_v43 = vld [vmem:[#allocation23 + $0x8] sm:$0xff]  ;;  %v2057_v44 = vld [vmem:[#allocation23] sm:$0xff]  ;;  %v2060_v47 = vld [vmem:[%s3578_s18 + $0x8] sm:$0xff]  ;;  %vm1612_vm4 = vcmask 253952  }
 0x8ff   : > { %1570 = vmatpush.bf16.msra.mxu0 %v2058_v43  ;;  %1605 = vmatpush.bf16.msra.mxu1 %v2060_v47  ;;  %v2059_v48 = vld [vmem:[%s3578_s18] sm:$0xff]  ;;  %v1548_v49 = vld [vmem:[#allocation25] sm:$0x1]  ;;  %v1583_v55 = vld [vmem:[#allocation26] sm:$0x1] }
 0x902   : > { %v1542_v45 = vld [vmem:[#allocation2] ss:$8 sm:$0x1] }
 0x903   : > { %v1543_v46 = vpack.c.bf16 %v1542_v45, %v1542_v45  ;;  %1571 = vmatpush.bf16.msra.mxu0 %v2057_v44  ;;  %1606 = vmatpush.bf16.msra.mxu1 %v2059_v48 }
 0x906   : > { %2031 = vmatmul.msk.bf16.vlgmr.msra.gmra.mxu0 %vm1172_vm6, %v1543_v46 }
 0x983   : > { %v1573_v50 = vpop.f32.mrf.mxu0 }
 0x984   : > { %v1574_v51 = vadd.f32 %v1573_v50, %v1548_v49 }
 0x986   : > { %2290 = vtanh.f32 %v1574_v51 }
 0x98b   : > { %v1575_v52 = vpop.f32.mrf.mxu0 }
 0x98c   : > { %v2291_v53 = vpop.eup %2290 }
 0x98d   : > { %v1578_v54 = vpack.c.bf16 %v2291_v53, %v2291_v53 }
 0x98f   : > { %2040 = vmatmul.msk.bf16.vlgmr.msra.gmra.mxu1 %vm1172_vm6, %v1578_v54 }
 0xa0c   : > { %v1608_v56 = vpop.f32.mrf.mxu1 }
 0xa0d   : > { %v1609_v57 = vadd.f32 %v1608_v56, %v1583_v55 }
 0xa0f   : > { %1613 = vst.msk [vmem:[%s1080_s19] sm:$0x1] %vm1612_vm4, %v1609_v57 }
 0xa14   : > { %v1610_v58 = vpop.f32.mrf.mxu1 }
 0xa15 PF: > { %s3579_s5 = sld [smem:[#allocation42_spill]]  ;;  %s1625_s7 = sshll.u32 %s1080_s19, 4  ;;  %s1626_s7 = int_to_ptr.vmem [resolvable:$true] %s1625_s7 }
 0xa16   : > { %s3580_s11 = sld [smem:[#allocation69_spill]]  ;;  %s1615_s30 = scalar_lea.sflag [#allocation7], %s3255_s14 }
 0xa1c   : > { %s1623_s17 = scalar_lea.hbm %s3580_s11, %s3579_s5  ;;  %s2732_s6 = scalar_lea.hbm %s3580_s11, 2 }
 0xa1d   : > { %s1627_s9 = sshll.u32 %s1623_s17, 4  ;;  %s1628_s9 = int_to_ptr.hbm [resolvable:$true] %s1627_s9 }
 0xa1e   : > { %s2726_s10 = sshra.s32 %s1628_s9, 4  ;;  %s2727_s10 = int_to_ptr.hbm [resolvable:$true] %s2726_s10 }
 0xa1f   : > { %s2728_s25 = scalar_lea.hbm %s2727_s10, 1  ;;  %p2733_p1 = scmp.lt.s32.totalorder %s2727_s10, %s3580_s11 }
 0xa20   : > { %p2729_p11 = scmp.ne.s32.totalorder %s2727_s10, %s2728_s25  ;;  %p2734_p5 = scmp.lt.s32.totalorder %s2732_s6, %s2728_s25 }
 0xa22   : > { %p2730_p13 = pnand %p2729_p11, %p3188_p8  ;;  %p2735_p10 = por %p2734_p5, %p2733_p1 }
 0xa24   : > { %p2731_p0 = pneg %p2730_p13 }
 0xa26   : > { %p2736_p12 = pnand %p2735_p10, %p2731_p0 }
 0xa28   : > { %2739 = shalt.err (!%p2736_p12)
}
 0xa29   : > { %2097 = dma.vmem_to_hbm [thread:$0]  (%p3188_p8), %s1626_s7, 16, %s1628_s9, %s1615_s30  }
 0xa2a PF: > { %p2156_p2 = scmp.ge.s32.totalorder %s2866_s4, 2  ;;  %s1639_s14 = sand.u32 1, %s2838_s24  }
 0xa2b   : > { %s1640_s19 = scalar_lea.sflag [#allocation7], %s1639_s14 }
 0xa2c   : > { %p2144_p3 = pnand %p2156_p2, %p3200_p7 }
 0xa2e   : > { %p2145_p6 = pneg %p2144_p3 }
 0xa30   : > { %2821 = dma.done.wait (%p2145_p6), %s1640_s19, 16  }
 0xa31   : > { %2823 = vsyncadd (%p2145_p6), %s1640_s19, 4294967280  ;;  %s53_s4 = sadd.s32 1, %s2866_s4   ;;  %s3581_s1 = sld [smem:[#allocation39_spill]] }
 0xa32   : > { %p50_p4 = scmp.ge.s32.totalorder %s53_s4, 6   ;;  %s3582_s8 = sld [smem:[#allocation47_spill]] }
 0xa33   : > { %s3583_s12 = sld [smem:[#allocation40_spill]]  ;;  %s3587_s22 = smov %s2834_s23 }
 0xa34   : > { %s3584_s25 = sld [smem:[#allocation48_spill]]  ;;  %s3589_s24 = smov %s2842_s2 }
 0xa35   : > { %s3585_s13 = sld [smem:[#allocation45_spill]]  ;;  %s3591_s3 = smov %s2858_s27 }
 0xa36   : > { %s3586_s29 = sld [smem:[#allocation46_spill]]  ;;  %s3592_s26 = smov %s2862_s28 }
 0xa38   : > { %s3588_s23 = smov %s3582_s8  ;;  %52 = sbr.rel (!%p50_p4) target bundleno = 43 (0x2b), region = 290 }
 0xa39   : > { %s3590_s2 = smov %s3583_s12 }
 0xa3b   : > { %s3593_s27 = smov %s3585_s13 }
 0xa3c   : > { %s3594_s28 = smov %s3586_s29 }
 0xa3d   :  { %1645 = vsyncpa [#allocation6], 1 }
 0xa3e   :  { %1647 = vsyncpa [#allocation6 + $0x1], 1 }
 0xa3f   :  { %1648 = vsyncpa [#allocation9], 1 }
 0xa40   :  { %1650 = vsyncpa [#allocation9 + $0x1], 1 }
 0xa41   :  { %1651 = vsyncpa [#allocation12], 1 }
 0xa42   :  { %1653 = vsyncpa [#allocation12 + $0x1], 1 }
 0xa43   :  { %1654 = vsyncpa [#allocation15], 1 }
 0xa44   :  { %1656 = vsyncpa [#allocation15 + $0x1], 1 }
 0xa45   :  { %1657 = vsyncpa [#allocation18], 1 }
 0xa46   :  { %1659 = vsyncpa [#allocation18 + $0x1], 1 }
 0xa47   :  { %1660 = vsyncpa [#allocation21], 1 }
 0xa48   :  { %1662 = vsyncpa [#allocation21 + $0x1], 1 }
 0xa49   :  { %1663 = vsyncpa [#allocation24], 1 }
 0xa4a   :  { %1664 = vsyncpa [#allocation27], 1 }
 0xa4b   :  { %1665 = vsyncpa [#allocation7], 1 }
 0xa4c   :  { %1667 = vsyncpa [#allocation7 + $0x1], 1 }

</bundles_post_ra>
